<compile_context>
chip_gen: v6e
topology: v6e:2x2x1
jax: 0.10.0
libtpu: 0.0.40
codegen_flags: <defaults>
</compile_context>

<pallas_src>
import functools

import jax
import jax.numpy as jnp
from jax.experimental import pallas as pl
from jax.experimental.pallas import tpu as pltpu


def _round_up(x, m):
    return ((x + m - 1) // m) * m


def decoder_mlp_kernel(z_ref, w1_ref, b1_ref, w2_ref, b2_ref, w3_ref, b3_ref,
                       o_ref, h2_ref):
    # Recompute the two hidden layers only when the M (row) tile changes,
    # i.e. at the first N-column tile of each row block.
    @pl.when(pl.program_id(1) == 0)
    def _():
        h1 = jnp.dot(z_ref[...], w1_ref[...],
                     preferred_element_type=jnp.float32) + b1_ref[...]
        h1 = jnp.maximum(h1, 0.0).astype(jnp.bfloat16)
        h2 = jnp.dot(h1, w2_ref[...],
                     preferred_element_type=jnp.float32) + b2_ref[...]
        h2_ref[...] = jnp.maximum(h2, 0.0).astype(jnp.bfloat16)

    # Third linear layer (logits) for the current N-column tile.
    o_ref[...] = (jnp.dot(h2_ref[...], w3_ref[...],
                          preferred_element_type=jnp.float32)
                  + b3_ref[...]).astype(o_ref.dtype)


def make_params(key, latent_dim, hidden, out_features):
    """PyTorch-Linear-style init: U(-1/sqrt(fan_in), 1/sqrt(fan_in))."""
    ks = jax.random.split(key, 6)

    def lin(kw, kb, fan_in, fan_out):
        bound = 1.0 / jnp.sqrt(jnp.float32(fan_in))
        w = jax.random.uniform(kw, (fan_in, fan_out), jnp.float32, -bound, bound)
        b = jax.random.uniform(kb, (1, fan_out), jnp.float32, -bound, bound)
        return w, b

    w1, b1 = lin(ks[0], ks[1], latent_dim, hidden)
    w2, b2 = lin(ks[2], ks[3], hidden, hidden)
    w3, b3 = lin(ks[4], ks[5], hidden, out_features)
    return (w1, b1, w2, b2, w3, b3)


@functools.partial(jax.jit, static_argnames=("image_w_h", "n_channels",
                                             "data_distribution"))
def decoder_mlp_block(z, params, *, image_w_h, n_channels,
                      data_distribution="bernoulli"):
    w1, b1, w2, b2, w3, b3 = params
    S, B, D = z.shape
    M = S * B
    hidden = w1.shape[1]
    N = w3.shape[1]

    if data_distribution == "bernoulli":
        num_classes = 1
    elif data_distribution == "multinomial":
        num_classes = 256
    else:
        raise NotImplementedError(data_distribution)
    assert N == n_channels * image_w_h * image_w_h * num_classes

    # ---------------- tiling ----------------
    Hp = _round_up(hidden, 128)                       # 500 -> 512
    tm = 256 if M >= 256 else _round_up(M, 8)         # row tile (M axis)
    M_pad = _round_up(M, tm)
    tn = min(2048, _round_up(N, 128))                 # output-column tile
    N_pad = _round_up(N, tn)

    # ---------------- pad + cast operands (cheap, fused under jit) ----------
    bf16 = jnp.bfloat16
    z2 = jnp.pad(z.reshape(M, D), ((0, M_pad - M), (0, 0))).astype(bf16)
    w1p = jnp.pad(w1, ((0, 0), (0, Hp - hidden))).astype(bf16)
    b1p = jnp.pad(b1.reshape(1, -1), ((0, 0), (0, Hp - hidden)))
    w2p = jnp.pad(w2, ((0, Hp - hidden), (0, Hp - hidden))).astype(bf16)
    b2p = jnp.pad(b2.reshape(1, -1), ((0, 0), (0, Hp - hidden)))
    w3p = jnp.pad(w3, ((0, Hp - hidden), (0, N_pad - N))).astype(bf16)
    b3p = jnp.pad(b3.reshape(1, -1), ((0, 0), (0, N_pad - N)))

    grid = (M_pad // tm, N_pad // tn)

    pred = pl.pallas_call(
        decoder_mlp_kernel,
        out_shape=jax.ShapeDtypeStruct((M_pad, N_pad), jnp.float32),
        grid_spec=pltpu.PrefetchScalarGridSpec(
            num_scalar_prefetch=0,
            grid=grid,
            in_specs=[
                pl.BlockSpec((tm, D), lambda i, j: (i, 0)),    # z rows stream
                pl.BlockSpec((D, Hp), lambda i, j: (0, 0)),    # w1 resident
                pl.BlockSpec((1, Hp), lambda i, j: (0, 0)),    # b1 resident
                pl.BlockSpec((Hp, Hp), lambda i, j: (0, 0)),   # w2 resident
                pl.BlockSpec((1, Hp), lambda i, j: (0, 0)),    # b2 resident
                pl.BlockSpec((Hp, tn), lambda i, j: (0, j)),   # w3 N-tiles
                pl.BlockSpec((1, tn), lambda i, j: (0, j)),    # b3 N-tiles
            ],
            out_specs=pl.BlockSpec((tm, tn), lambda i, j: (i, j)),
            scratch_shapes=[pltpu.VMEM((tm, Hp), bf16)],       # cached h2
        ),
        compiler_params=pltpu.CompilerParams(
            dimension_semantics=("parallel", "arbitrary"),
            vmem_limit_bytes=32 * 1024 * 1024,
        ),
    )(z2, w1p, b1p, w2p, b2p, w3p, b3p)

    pred_flat = pred[:M, :N]

    if data_distribution == "bernoulli":
        return pred_flat.reshape(S, B, n_channels, image_w_h, image_w_h)
    else:
        # TODO(synk): fold this permute into the kernel out_spec index_map
        # (write [..., W, H, 256] lane-dense directly) to save an extra HBM pass.
        p = pred_flat.reshape(S, B, n_channels, num_classes, image_w_h,
                              image_w_h)
        return jnp.transpose(p, (0, 1, 2, 4, 5, 3))


def reference(z, params):
    """Mirrors the kernel's bf16 operand rounding with f32 accumulation."""
    w1, b1, w2, b2, w3, b3 = params
    hi = jax.lax.Precision.HIGHEST
    c = lambda a: a.astype(jnp.bfloat16).astype(jnp.float32)
    S, B, D = z.shape
    x = c(z.reshape(-1, D))
    h = jnp.maximum(jnp.dot(x, c(w1), precision=hi) + b1, 0.0)
    h = jnp.maximum(jnp.dot(c(h), c(w2), precision=hi) + b2, 0.0)
    return jnp.dot(c(h), c(w3), precision=hi) + b3


if __name__ == "__main__":
    key = jax.random.PRNGKey(0)
    k_z, k_p, k_z2, k_p2 = jax.random.split(key, 4)

    # ---- bernoulli config (num_classes = 1) --------------------------------
    S, B = 2, 4                 # z is [S, B, D]
    latent_dim = 32
    image_w_h = 16
    n_channels = 4
    hidden = 500
    out_features = n_channels * image_w_h * image_w_h * 1   # 1024

    z = jax.random.normal(k_z, (S, B, latent_dim), jnp.float32)
    params = make_params(k_p, latent_dim, hidden, out_features)

    out = decoder_mlp_block(z, params, image_w_h=image_w_h,
                            n_channels=n_channels,
                            data_distribution="bernoulli")
    out = jax.block_until_ready(out)
    assert out.shape == (S, B, n_channels, image_w_h, image_w_h), out.shape
    ref = reference(z, params).reshape(out.shape)
    assert jnp.allclose(out, ref, atol=1e-2, rtol=1e-2), \
        float(jnp.max(jnp.abs(out - ref)))

    # ---- small multinomial config (num_classes = 256; exercises N tiling) --
    mn_w_h, mn_c = 4, 1
    out_features_mn = mn_c * mn_w_h * mn_w_h * 256           # 4096 -> 2 N-tiles
    z_mn = jax.random.normal(k_z2, (S, B, latent_dim), jnp.float32)
    params_mn = make_params(k_p2, latent_dim, hidden, out_features_mn)

    out_mn = decoder_mlp_block(z_mn, params_mn, image_w_h=mn_w_h,
                               n_channels=mn_c,
                               data_distribution="multinomial")
    out_mn = jax.block_until_ready(out_mn)
    assert out_mn.shape == (S, B, mn_c, mn_w_h, mn_w_h, 256), out_mn.shape
    ref_mn = reference(z_mn, params_mn).reshape(
        S, B, mn_c, 256, mn_w_h, mn_w_h).transpose(0, 1, 2, 4, 5, 3)
    assert jnp.allclose(out_mn, ref_mn, atol=1e-2, rtol=1e-2), \
        float(jnp.max(jnp.abs(out_mn - ref_mn)))

    print("KERNEL_OK")
</pallas_src>

<mosaic_0001>
module attributes {stable_mosaic.version = 11 : i64} {
  func.func @decoder_mlp_kernel(%arg0: i32, %arg1: i32, %arg2: memref<8x32xbf16, #tpu.memory_space<vmem>>, %arg3: memref<32x512xbf16, #tpu.memory_space<vmem>>, %arg4: memref<1x512xf32, #tpu.memory_space<vmem>>, %arg5: memref<512x512xbf16, #tpu.memory_space<vmem>>, %arg6: memref<1x512xf32, #tpu.memory_space<vmem>>, %arg7: memref<512x1024xbf16, #tpu.memory_space<vmem>>, %arg8: memref<1x1024xf32, #tpu.memory_space<vmem>>, %arg9: memref<8x1024xf32, #tpu.memory_space<vmem>>, %arg10: memref<8x512xbf16, #tpu.memory_space<vmem>>) attributes {dimension_semantics = [#tpu.dimension_semantics<parallel>, #tpu.dimension_semantics<arbitrary>], iteration_bounds = array<i64: 1, 1>, scalar_prefetch = 0 : i64, scratch_operands = 1 : i64, tpu.core_type = #tpu.core_type<tc>, window_params = [{transform_indices = @transform_0, window_bounds = array<i64: 8, 32>}, {pipeline_mode = #tpu.pipeline_mode<synchronous>, transform_indices = @transform_1, window_bounds = array<i64: 32, 512>}, {pipeline_mode = #tpu.pipeline_mode<synchronous>, transform_indices = @transform_2, window_bounds = array<i64: 1, 512>}, {pipeline_mode = #tpu.pipeline_mode<synchronous>, transform_indices = @transform_3, window_bounds = array<i64: 512, 512>}, {pipeline_mode = #tpu.pipeline_mode<synchronous>, transform_indices = @transform_4, window_bounds = array<i64: 1, 512>}, {transform_indices = @transform_5, window_bounds = array<i64: 512, 1024>}, {transform_indices = @transform_6, window_bounds = array<i64: 1, 1024>}, {transform_indices = @transform_7, window_bounds = array<i64: 8, 1024>}]} {
    %c0_i32 = arith.constant 0 : i32
    %0 = arith.cmpi eq, %arg1, %c0_i32 : i32
    %1 = arith.extui %0 : i1 to i32
    %c0_i32_0 = arith.constant 0 : i32
    %2 = arith.cmpi ne, %1, %c0_i32_0 : i32
    scf.if %2 {
      %c0_8 = arith.constant 0 : index
      %c0_9 = arith.constant 0 : index
      %10 = vector.load %arg2[%c0_8, %c0_9] : memref<8x32xbf16, #tpu.memory_space<vmem>>, vector<8x32xbf16>
      %c0_10 = arith.constant 0 : index
      %c0_11 = arith.constant 0 : index
      %11 = vector.load %arg3[%c0_10, %c0_11] : memref<32x512xbf16, #tpu.memory_space<vmem>>, vector<32x512xbf16>
      %cst_12 = arith.constant dense<0.000000e+00> : vector<8x512xf32>
      %12 = tpu.matmul %10, %11, %cst_12 {dimension_numbers = #tpu.dot_dimension_numbers<[1], [0], [0], [1], [0, 0, 1, 1], [], []>} : vector<8x32xbf16>, vector<32x512xbf16>, vector<8x512xf32> -> vector<8x512xf32>
      %c0_13 = arith.constant 0 : index
      %c0_14 = arith.constant 0 : index
      %13 = vector.load %arg4[%c0_13, %c0_14] : memref<1x512xf32, #tpu.memory_space<vmem>>, vector<1x512xf32>
      %14 = vector.broadcast %13 : vector<1x512xf32> to vector<8x512xf32>
      %15 = arith.addf %12, %14 : vector<8x512xf32>
      %cst_15 = arith.constant 0.000000e+00 : f32
      %16 = vector.broadcast %cst_15 : f32 to vector<8x512xf32>
      %17 = arith.maximumf %15, %16 : vector<8x512xf32>
      %18 = arith.truncf %17 : vector<8x512xf32> to vector<8x512xbf16>
      %c0_16 = arith.constant 0 : index
      %c0_17 = arith.constant 0 : index
      %19 = vector.load %arg5[%c0_16, %c0_17] : memref<512x512xbf16, #tpu.memory_space<vmem>>, vector<512x512xbf16>
      %cst_18 = arith.constant dense<0.000000e+00> : vector<8x512xf32>
      %20 = tpu.matmul %18, %19, %cst_18 {dimension_numbers = #tpu.dot_dimension_numbers<[1], [0], [0], [1], [0, 0, 1, 1], [], []>} : vector<8x512xbf16>, vector<512x512xbf16>, vector<8x512xf32> -> vector<8x512xf32>
      %c0_19 = arith.constant 0 : index
      %c0_20 = arith.constant 0 : index
      %21 = vector.load %arg6[%c0_19, %c0_20] : memref<1x512xf32, #tpu.memory_space<vmem>>, vector<1x512xf32>
      %22 = vector.broadcast %21 : vector<1x512xf32> to vector<8x512xf32>
      %23 = arith.addf %20, %22 : vector<8x512xf32>
      %cst_21 = arith.constant 0.000000e+00 : f32
      %24 = vector.broadcast %cst_21 : f32 to vector<8x512xf32>
      %25 = arith.maximumf %23, %24 : vector<8x512xf32>
      %26 = arith.truncf %25 : vector<8x512xf32> to vector<8x512xbf16>
      %c0_22 = arith.constant 0 : index
      %c0_23 = arith.constant 0 : index
      %27 = vector.load %arg10[%c0_22, %c0_23] : memref<8x512xbf16, #tpu.memory_space<vmem>>, vector<8x512xbf16>
      tpu.vector_store %arg10[%c0_22, %c0_23], %26 {strides = array<i32>} : memref<8x512xbf16, #tpu.memory_space<vmem>>, vector<8x512xbf16>,
    } else {
    }
    %c0 = arith.constant 0 : index
    %c0_1 = arith.constant 0 : index
    %3 = vector.load %arg10[%c0, %c0_1] : memref<8x512xbf16, #tpu.memory_space<vmem>>, vector<8x512xbf16>
    %c0_2 = arith.constant 0 : index
    %c0_3 = arith.constant 0 : index
    %4 = vector.load %arg7[%c0_2, %c0_3] : memref<512x1024xbf16, #tpu.memory_space<vmem>>, vector<512x1024xbf16>
    %cst = arith.constant dense<0.000000e+00> : vector<8x1024xf32>
    %5 = tpu.matmul %3, %4, %cst {dimension_numbers = #tpu.dot_dimension_numbers<[1], [0], [0], [1], [0, 0, 1, 1], [], []>} : vector<8x512xbf16>, vector<512x1024xbf16>, vector<8x1024xf32> -> vector<8x1024xf32>
    %c0_4 = arith.constant 0 : index
    %c0_5 = arith.constant 0 : index
    %6 = vector.load %arg8[%c0_4, %c0_5] : memref<1x1024xf32, #tpu.memory_space<vmem>>, vector<1x1024xf32>
    %7 = vector.broadcast %6 : vector<1x1024xf32> to vector<8x1024xf32>
    %8 = arith.addf %5, %7 : vector<8x1024xf32>
    %c0_6 = arith.constant 0 : index
    %c0_7 = arith.constant 0 : index
    %9 = vector.load %arg9[%c0_6, %c0_7] : memref<8x1024xf32, #tpu.memory_space<vmem>>, vector<8x1024xf32>
    tpu.vector_store %arg9[%c0_6, %c0_7], %8 {strides = array<i32>} : memref<8x1024xf32, #tpu.memory_space<vmem>>, vector<8x1024xf32>,
    return
  }
  func.func @transform_0(%arg0: i32, %arg1: i32) -> (i32, i32) {
    %c0_i32 = arith.constant 0 : i32
    %c0_i32_0 = arith.constant 0 : i32
    return %arg0, %c0_i32 : i32, i32
  }
  func.func @transform_1(%arg0: i32, %arg1: i32) -> (i32, i32) {
    %c0_i32 = arith.constant 0 : i32
    %c0_i32_0 = arith.constant 0 : i32
    %c0_i32_1 = arith.constant 0 : i32
    return %c0_i32, %c0_i32_0 : i32, i32
  }
  func.func @transform_2(%arg0: i32, %arg1: i32) -> (i32, i32) {
    %c0_i32 = arith.constant 0 : i32
    %c0_i32_0 = arith.constant 0 : i32
    %c0_i32_1 = arith.constant 0 : i32
    return %c0_i32, %c0_i32_0 : i32, i32
  }
  func.func @transform_3(%arg0: i32, %arg1: i32) -> (i32, i32) {
    %c0_i32 = arith.constant 0 : i32
    %c0_i32_0 = arith.constant 0 : i32
    %c0_i32_1 = arith.constant 0 : i32
    return %c0_i32, %c0_i32_0 : i32, i32
  }
  func.func @transform_4(%arg0: i32, %arg1: i32) -> (i32, i32) {
    %c0_i32 = arith.constant 0 : i32
    %c0_i32_0 = arith.constant 0 : i32
    %c0_i32_1 = arith.constant 0 : i32
    return %c0_i32, %c0_i32_0 : i32, i32
  }
  func.func @transform_5(%arg0: i32, %arg1: i32) -> (i32, i32) {
    %c0_i32 = arith.constant 0 : i32
    %c0_i32_0 = arith.constant 0 : i32
    return %c0_i32, %arg1 : i32, i32
  }
  func.func @transform_6(%arg0: i32, %arg1: i32) -> (i32, i32) {
    %c0_i32 = arith.constant 0 : i32
    %c0_i32_0 = arith.constant 0 : i32
    return %c0_i32, %arg1 : i32, i32
  }
  func.func @transform_7(%arg0: i32, %arg1: i32) -> (i32, i32) {
    %c0_i32 = arith.constant 0 : i32
    return %arg0, %arg1 : i32, i32
  }
}

</mosaic_0001>

<bundles_post_ra>
// kernel: decoder_mlp_block.1
= control target key start
LH: loop header
LB: loop body
LE: loop exit
PB: predicated region body
PF: predicated region fallthrough
CT: control target
= control target key end

     0   :  { %v3717_v1 = vmov 0   ;;  %vm102_vm0 = vcmask 261120   ;;  %s5066_s1 = inlined_call_operand.vmem [shape: bf16[32,512], index: 1, kind: input, shape index: {}]   ;;  %s5067_s0 = inlined_call_operand.vmem [shape: bf16[8,32], index: 0, kind: input, shape index: {}]   ;;  %s5068_s3 = inlined_call_operand.vmem [shape: bf16[512,512], index: 3, kind: input, shape index: {}]   ;;  %s5069_s2 = inlined_call_operand.vmem [shape: f32[1,512], index: 2, kind: input, shape index: {}]   ;;  %s5070_s5 = inlined_call_operand.vmem [shape: bf16[512,1024], index: 5, kind: input, shape index: {}]   ;;  %s5071_s4 = inlined_call_operand.vmem [shape: f32[1,512], index: 4, kind: input, shape index: {}]   ;;  %s5072_s6 = inlined_call_operand.vmem [shape: f32[1,1024], index: 6, kind: input, shape index: {}]   ;;  %s5073_s7 = inlined_call_operand.vmem [shape: f32[8,1024], index: 7, kind: output, shape index: {}]  }
   0x1   :  { %v3513_v0 = vld [vmem:[%s5066_s1 + $0x24] ss:$16 sps:$4 sm:$0xff]   ;;  %138 = vmatprep.mubr.bf16.mxu0 %v3717_v1  ;;  %179 = vmatprep.mubr.bf16.mxu1 %v3717_v1  ;;  %v3515_v2 = vld [vmem:[%s5066_s1 + $0x2c] ss:$16 sps:$4 sm:$0xff]   ;;  %v3517_v3 = vld [vmem:[%s5066_s1 + $0x20] ss:$16 sps:$4 sm:$0xff]  }
   0x2   :  { %118 = vmatprep.subr.bf16.mxu0 %v3513_v0  ;;  %v3518_v4 = vld [vmem:[%s5066_s1 + $0x28] ss:$16 sps:$4 sm:$0xff]   ;;  %159 = vmatprep.subr.bf16.mxu1 %v3515_v2  ;;  %v3519_v5 = vld [vmem:[%s5066_s1 + $0x4] ss:$16 sps:$4 sm:$0xff]   ;;  %v3521_v6 = vld [vmem:[%s5066_s1 + $0xc] ss:$16 sps:$4 sm:$0xff]  }
   0x3   :  { %119 = vmatpush1.bf16.msra.mxu0 %v3517_v3  ;;  %160 = vmatpush1.bf16.msra.mxu1 %v3518_v4  ;;  %v3523_v7 = vld [vmem:[%s5066_s1] ss:$16 sps:$4 sm:$0xff]   ;;  %v3524_v8 = vld [vmem:[%s5066_s1 + $0x8] ss:$16 sps:$4 sm:$0xff]   ;;  %v3527_v11 = vld [vmem:[%s5068_s3 + $0xe4] ss:$16 sps:$4 sm:$0xff]  }
   0x4   :  { %120 = vmatprep.subr.bf16.mxu0 %v3519_v5  ;;  %161 = vmatprep.subr.bf16.mxu1 %v3521_v6  ;;  %v31_v9 = vld [vmem:[%s5067_s0] sm:$0xf]  ;;  %v3530_v13 = vld [vmem:[%s5068_s3 + $0x2e4] ss:$16 sps:$4 sm:$0xff]  }
   0x5   :  { %v3525_v10 = vld [vmem:[%s5068_s3 + $0xe0] ss:$16 sps:$4 sm:$0xff]   ;;  %v3533_v14 = vld [vmem:[%s5068_s3 + $0xc4] ss:$16 sps:$4 sm:$0xff]  }
   0x6   :  { %v3528_v12 = vld [vmem:[%s5068_s3 + $0x2e0] ss:$16 sps:$4 sm:$0xff]   ;;  %v3536_v15 = vld [vmem:[%s5068_s3 + $0x2c4] ss:$16 sps:$4 sm:$0xff]  }
   0x7   :  { %121 = vmatpush1.bf16.msra.mxu0 %v3523_v7  ;;  %162 = vmatpush1.bf16.msra.mxu1 %v3524_v8  ;;  %v3531_v16 = vld [vmem:[%s5068_s3 + $0xc0] ss:$16 sps:$4 sm:$0xff]   ;;  %v3539_v18 = vld [vmem:[%s5068_s3 + $0xa4] ss:$16 sps:$4 sm:$0xff]  }
   0x8   :  { %986 = vmatprep.subr.bf16.mxu0 %v3527_v11  ;;  %1027 = vmatprep.subr.bf16.mxu1 %v3530_v13  ;;  %v3534_v17 = vld [vmem:[%s5068_s3 + $0x2c0] ss:$16 sps:$4 sm:$0xff]   ;;  %v3542_v19 = vld [vmem:[%s5068_s3 + $0x2a4] ss:$16 sps:$4 sm:$0xff]   ;;  %v3626_v11 = vld [vmem:[%s5068_s3 + $0x2ec] ss:$16 sps:$4 sm:$0xff]  }
   0x9   :  { %v3537_v20 = vld [vmem:[%s5068_s3 + $0xa0] ss:$16 sps:$4 sm:$0xff]   ;;  %v3545_v22 = vld [vmem:[%s5068_s3 + $0x84] ss:$16 sps:$4 sm:$0xff]  }
   0xa   :  { %3114 = vmatmul.mubr.msk.bf16.vlgmr.msra.gmra.mxu0 %vm102_vm0, %v31_v9  ;;  %3115 = vmatmul.mubr.msk.bf16.vlgmr.msra.gmra.mxu1 %vm102_vm0, %v31_v9  ;;  %v3540_v21 = vld [vmem:[%s5068_s3 + $0x2a0] ss:$16 sps:$4 sm:$0xff]   ;;  %v3548_v23 = vld [vmem:[%s5068_s3 + $0x284] ss:$16 sps:$4 sm:$0xff]  }
   0xb   :  { %987 = vmatpush1.bf16.msra.mxu0 %v3525_v10  ;;  %1028 = vmatpush1.bf16.msra.mxu1 %v3528_v12  ;;  %v3543_v24 = vld [vmem:[%s5068_s3 + $0x80] ss:$16 sps:$4 sm:$0xff]   ;;  %v3551_v26 = vld [vmem:[%s5068_s3 + $0x64] ss:$16 sps:$4 sm:$0xff]   ;;  %v3623_v10 = vld [vmem:[%s5068_s3 + $0xec] ss:$16 sps:$4 sm:$0xff]   ;;  %v42_v12 = vlaneseq }
   0xc   :  { %988 = vmatprep.subr.bf16.mxu0 %v3533_v14  ;;  %1029 = vmatprep.subr.bf16.mxu1 %v3536_v15  ;;  %v3546_v25 = vld [vmem:[%s5068_s3 + $0x280] ss:$16 sps:$4 sm:$0xff]   ;;  %v3554_v27 = vld [vmem:[%s5068_s3 + $0x264] ss:$16 sps:$4 sm:$0xff]  }
   0xd   :  { %v3549_v28 = vld [vmem:[%s5068_s3 + $0x60] ss:$16 sps:$4 sm:$0xff]   ;;  %v3557_v30 = vld [vmem:[%s5068_s3 + $0x44] ss:$16 sps:$4 sm:$0xff]   ;;  %v3983_v13 = vshrl.u32 %v42_v12, 7 }
   0xe   :  { %v3552_v29 = vld [vmem:[%s5068_s3 + $0x260] ss:$16 sps:$4 sm:$0xff]   ;;  %v3560_v31 = vld [vmem:[%s5068_s3 + $0x244] ss:$16 sps:$4 sm:$0xff]   ;;  %v3672_v12 = vld [vmem:[%s5068_s3 + $0x3e8] ss:$16 sps:$4 sm:$0xff]  }
   0xf   :  { %989 = vmatpush1.bf16.msra.mxu0 %v3531_v16  ;;  %1030 = vmatpush1.bf16.msra.mxu1 %v3534_v17  ;;  %v3555_v32 = vld [vmem:[%s5068_s3 + $0x40] ss:$16 sps:$4 sm:$0xff]   ;;  %v3563_v34 = vld [vmem:[%s5068_s3 + $0x24] ss:$16 sps:$4 sm:$0xff]   ;;  %v3986_v14 = vsub.s32 0, %v3983_v13  ;;  %v3989_v15 = vsub.s32 2, %v3983_v13 }
  0x10   :  { %990 = vmatprep.subr.bf16.mxu0 %v3539_v18  ;;  %1031 = vmatprep.subr.bf16.mxu1 %v3542_v19  ;;  %v3558_v33 = vld [vmem:[%s5068_s3 + $0x240] ss:$16 sps:$4 sm:$0xff]   ;;  %v3566_v35 = vld [vmem:[%s5068_s3 + $0x224] ss:$16 sps:$4 sm:$0xff]   ;;  %v3995_v17 = vsub.s32 1, %v3983_v13  ;;  %v3998_v18 = vsub.s32 3, %v3983_v13 }
  0x11   :  { %v3561_v36 = vld [vmem:[%s5068_s3 + $0x20] ss:$16 sps:$4 sm:$0xff]   ;;  %v3569_v38 = vld [vmem:[%s5068_s3 + $0x4] ss:$16 sps:$4 sm:$0xff]  }
  0x12   :  { %v3564_v37 = vld [vmem:[%s5068_s3 + $0x220] ss:$16 sps:$4 sm:$0xff]   ;;  %v3572_v39 = vld [vmem:[%s5068_s3 + $0x204] ss:$16 sps:$4 sm:$0xff]  }
  0x13   :  { %991 = vmatpush1.bf16.msra.mxu0 %v3537_v20  ;;  %1032 = vmatpush1.bf16.msra.mxu1 %v3540_v21  ;;  %v3567_v40 = vld [vmem:[%s5068_s3] ss:$16 sps:$4 sm:$0xff]   ;;  %v3575_v42 = vld [vmem:[%s5068_s3 + $0x1e4] ss:$16 sps:$4 sm:$0xff]  }
  0x14   :  { %992 = vmatprep.subr.bf16.mxu0 %v3545_v22  ;;  %1033 = vmatprep.subr.bf16.mxu1 %v3548_v23  ;;  %v3570_v41 = vld [vmem:[%s5068_s3 + $0x200] ss:$16 sps:$4 sm:$0xff]   ;;  %v3578_v43 = vld [vmem:[%s5068_s3 + $0x3e4] ss:$16 sps:$4 sm:$0xff]  }
  0x15   :  { %v3573_v44 = vld [vmem:[%s5068_s3 + $0x1e0] ss:$16 sps:$4 sm:$0xff]   ;;  %v3581_v46 = vld [vmem:[%s5068_s3 + $0x1c4] ss:$16 sps:$4 sm:$0xff]  }
  0x16   :  { %v3576_v45 = vld [vmem:[%s5068_s3 + $0x3e0] ss:$16 sps:$4 sm:$0xff]   ;;  %v3584_v47 = vld [vmem:[%s5068_s3 + $0x3c4] ss:$16 sps:$4 sm:$0xff]  }
  0x17   :  { %993 = vmatpush1.bf16.msra.mxu0 %v3543_v24  ;;  %1034 = vmatpush1.bf16.msra.mxu1 %v3546_v25  ;;  %v3579_v48 = vld [vmem:[%s5068_s3 + $0x1c0] ss:$16 sps:$4 sm:$0xff]   ;;  %v3587_v50 = vld [vmem:[%s5068_s3 + $0x1a4] ss:$16 sps:$4 sm:$0xff]  }
  0x18   :  { %994 = vmatprep.subr.bf16.mxu0 %v3551_v26  ;;  %1035 = vmatprep.subr.bf16.mxu1 %v3554_v27  ;;  %v3582_v49 = vld [vmem:[%s5068_s3 + $0x3c0] ss:$16 sps:$4 sm:$0xff]   ;;  %v3590_v51 = vld [vmem:[%s5068_s3 + $0x3a4] ss:$16 sps:$4 sm:$0xff]  }
  0x19   :  { %v3585_v52 = vld [vmem:[%s5068_s3 + $0x1a0] ss:$16 sps:$4 sm:$0xff]   ;;  %v3593_v54 = vld [vmem:[%s5068_s3 + $0x184] ss:$16 sps:$4 sm:$0xff]  }
  0x1a   :  { %v3588_v53 = vld [vmem:[%s5068_s3 + $0x3a0] ss:$16 sps:$4 sm:$0xff]   ;;  %v3596_v55 = vld [vmem:[%s5068_s3 + $0x384] ss:$16 sps:$4 sm:$0xff]  }
  0x1b   :  { %995 = vmatpush1.bf16.msra.mxu0 %v3549_v28  ;;  %1036 = vmatpush1.bf16.msra.mxu1 %v3552_v29  ;;  %v3591_v56 = vld [vmem:[%s5068_s3 + $0x180] ss:$16 sps:$4 sm:$0xff]   ;;  %v3599_v58 = vld [vmem:[%s5068_s3 + $0x164] ss:$16 sps:$4 sm:$0xff]  }
  0x1c   :  { %996 = vmatprep.subr.bf16.mxu0 %v3557_v30  ;;  %1037 = vmatprep.subr.bf16.mxu1 %v3560_v31  ;;  %v3594_v57 = vld [vmem:[%s5068_s3 + $0x380] ss:$16 sps:$4 sm:$0xff]   ;;  %v3602_v59 = vld [vmem:[%s5068_s3 + $0x364] ss:$16 sps:$4 sm:$0xff]  }
  0x1d   :  { %v3597_v60 = vld [vmem:[%s5068_s3 + $0x160] ss:$16 sps:$4 sm:$0xff]   ;;  %v3605_v62 = vld [vmem:[%s5068_s3 + $0x144] ss:$16 sps:$4 sm:$0xff]  }
  0x1e   :  { %v3600_v61 = vld [vmem:[%s5068_s3 + $0x360] ss:$16 sps:$4 sm:$0xff]   ;;  %v3608_v63 = vld [vmem:[%s5068_s3 + $0x344] ss:$16 sps:$4 sm:$0xff]  }
  0x1f   :  { %997 = vmatpush1.bf16.msra.mxu0 %v3555_v32  ;;  %1038 = vmatpush1.bf16.msra.mxu1 %v3558_v33  ;;  %v3603_v0 = vld [vmem:[%s5068_s3 + $0x140] ss:$16 sps:$4 sm:$0xff]   ;;  %v3611_v2 = vld [vmem:[%s5068_s3 + $0x124] ss:$16 sps:$4 sm:$0xff]  }
  0x20   :  { %998 = vmatprep.subr.bf16.mxu0 %v3563_v34  ;;  %1039 = vmatprep.subr.bf16.mxu1 %v3566_v35  ;;  %v3606_v1 = vld [vmem:[%s5068_s3 + $0x340] ss:$16 sps:$4 sm:$0xff]   ;;  %v3614_v3 = vld [vmem:[%s5068_s3 + $0x324] ss:$16 sps:$4 sm:$0xff]  }
  0x21   :  { %v3609_v4 = vld [vmem:[%s5068_s3 + $0x120] ss:$16 sps:$4 sm:$0xff]   ;;  %v3617_v6 = vld [vmem:[%s5068_s3 + $0x104] ss:$16 sps:$4 sm:$0xff]  }
  0x22   :  { %v3612_v5 = vld [vmem:[%s5068_s3 + $0x320] ss:$16 sps:$4 sm:$0xff]   ;;  %v3620_v7 = vld [vmem:[%s5068_s3 + $0x304] ss:$16 sps:$4 sm:$0xff]  }
  0x23   :  { %999 = vmatpush1.bf16.msra.mxu0 %v3561_v36  ;;  %1040 = vmatpush1.bf16.msra.mxu1 %v3564_v37  ;;  %v3615_v8 = vld [vmem:[%s5068_s3 + $0x100] ss:$16 sps:$4 sm:$0xff]  }
  0x24   :  { %1000 = vmatprep.subr.bf16.mxu0 %v3569_v38  ;;  %1041 = vmatprep.subr.bf16.mxu1 %v3572_v39  ;;  %v3618_v9 = vld [vmem:[%s5068_s3 + $0x300] ss:$16 sps:$4 sm:$0xff]  }
  0x25   :  { %v40_v16 = vld [vmem:[%s5069_s2] sm:$0xf] }
  0x26   :  { %v45_v19 = vrot.slane %v40_v16, %v3986_v14  ;;  %v53_v20 = vrot.slane %v40_v16, %v3989_v15  ;;  %v49_v21 = vrot.slane %v40_v16, %v3995_v17  ;;  %v57_v22 = vrot.slane %v40_v16, %v3998_v18  ;;  %v3677_v16 = vld [vmem:[%s5068_s3 + $0x1cc] ss:$16 sps:$4 sm:$0xff]  }
  0x27   :  { %1001 = vmatpush1.bf16.msra.mxu0 %v3567_v40  ;;  %1042 = vmatpush1.bf16.msra.mxu1 %v3570_v41 }
  0x28   :  { %1002 = vmatprep.subr.bf16.mxu0 %v3575_v42  ;;  %1043 = vmatprep.subr.bf16.mxu1 %v3578_v43  ;;  %v3621_v42 = vld [vmem:[%s5068_s3 + $0xe8] ss:$16 sps:$4 sm:$0xff]  }
  0x29   :  { %v3624_v43 = vld [vmem:[%s5068_s3 + $0x2e8] ss:$16 sps:$4 sm:$0xff]  }
  0x2b   :  { %1003 = vmatpush2.bf16.msra.mxu0 %v3573_v44  ;;  %1044 = vmatpush2.bf16.msra.mxu1 %v3576_v45  ;;  %v3629_v45 = vld [vmem:[%s5068_s3 + $0xcc] ss:$16 sps:$4 sm:$0xff]  }
  0x2c   :  { %1004 = vmatprep.subr.bf16.mxu0 %v3581_v46  ;;  %1045 = vmatprep.subr.bf16.mxu1 %v3584_v47  ;;  %v3632_v46 = vld [vmem:[%s5068_s3 + $0x2cc] ss:$16 sps:$4 sm:$0xff]   ;;  %v3627_v47 = vld [vmem:[%s5068_s3 + $0xc8] ss:$16 sps:$4 sm:$0xff]  }
  0x2f   :  { %1005 = vmatpush2.bf16.msra.mxu0 %v3579_v48  ;;  %1046 = vmatpush2.bf16.msra.mxu1 %v3582_v49  ;;  %v3630_v48 = vld [vmem:[%s5068_s3 + $0x2c8] ss:$16 sps:$4 sm:$0xff]   ;;  %v3635_v49 = vld [vmem:[%s5068_s3 + $0xac] ss:$16 sps:$4 sm:$0xff]  }
  0x30   :  { %1006 = vmatprep.subr.bf16.mxu0 %v3587_v50  ;;  %1047 = vmatprep.subr.bf16.mxu1 %v3590_v51  ;;  %v3638_v50 = vld [vmem:[%s5068_s3 + $0x2ac] ss:$16 sps:$4 sm:$0xff]   ;;  %v3633_v51 = vld [vmem:[%s5068_s3 + $0xa8] ss:$16 sps:$4 sm:$0xff]  }
  0x33   :  { %1007 = vmatpush2.bf16.msra.mxu0 %v3585_v52  ;;  %1048 = vmatpush2.bf16.msra.mxu1 %v3588_v53  ;;  %v3636_v52 = vld [vmem:[%s5068_s3 + $0x2a8] ss:$16 sps:$4 sm:$0xff]   ;;  %v3641_v53 = vld [vmem:[%s5068_s3 + $0x8c] ss:$16 sps:$4 sm:$0xff]  }
  0x34   :  { %1008 = vmatprep.subr.bf16.mxu0 %v3593_v54  ;;  %1049 = vmatprep.subr.bf16.mxu1 %v3596_v55  ;;  %v3644_v54 = vld [vmem:[%s5068_s3 + $0x28c] ss:$16 sps:$4 sm:$0xff]   ;;  %v3639_v55 = vld [vmem:[%s5068_s3 + $0x88] ss:$16 sps:$4 sm:$0xff]  }
  0x37   :  { %1009 = vmatpush2.bf16.msra.mxu0 %v3591_v56  ;;  %1050 = vmatpush2.bf16.msra.mxu1 %v3594_v57  ;;  %v3642_v56 = vld [vmem:[%s5068_s3 + $0x288] ss:$16 sps:$4 sm:$0xff]   ;;  %v3647_v57 = vld [vmem:[%s5068_s3 + $0x6c] ss:$16 sps:$4 sm:$0xff]  }
  0x38   :  { %1010 = vmatprep.subr.bf16.mxu0 %v3599_v58  ;;  %1051 = vmatprep.subr.bf16.mxu1 %v3602_v59  ;;  %v3650_v58 = vld [vmem:[%s5068_s3 + $0x26c] ss:$16 sps:$4 sm:$0xff]   ;;  %v3645_v59 = vld [vmem:[%s5068_s3 + $0x68] ss:$16 sps:$4 sm:$0xff]  }
  0x3b   :  { %1011 = vmatpush2.bf16.msra.mxu0 %v3597_v60  ;;  %1052 = vmatpush2.bf16.msra.mxu1 %v3600_v61  ;;  %v3648_v60 = vld [vmem:[%s5068_s3 + $0x268] ss:$16 sps:$4 sm:$0xff]   ;;  %v3653_v61 = vld [vmem:[%s5068_s3 + $0x4c] ss:$16 sps:$4 sm:$0xff]  }
  0x3c   :  { %1012 = vmatprep.subr.bf16.mxu0 %v3605_v62  ;;  %1053 = vmatprep.subr.bf16.mxu1 %v3608_v63  ;;  %v3656_v62 = vld [vmem:[%s5068_s3 + $0x24c] ss:$16 sps:$4 sm:$0xff]   ;;  %v3651_v63 = vld [vmem:[%s5068_s3 + $0x48] ss:$16 sps:$4 sm:$0xff]  }
  0x3f   :  { %1013 = vmatpush2.bf16.msra.mxu0 %v3603_v0  ;;  %1054 = vmatpush2.bf16.msra.mxu1 %v3606_v1  ;;  %v3654_v0 = vld [vmem:[%s5068_s3 + $0x248] ss:$16 sps:$4 sm:$0xff]   ;;  %v3659_v1 = vld [vmem:[%s5068_s3 + $0x2c] ss:$16 sps:$4 sm:$0xff]  }
  0x40   :  { %1014 = vmatprep.subr.bf16.mxu0 %v3611_v2  ;;  %1055 = vmatprep.subr.bf16.mxu1 %v3614_v3  ;;  %v3662_v2 = vld [vmem:[%s5068_s3 + $0x22c] ss:$16 sps:$4 sm:$0xff]   ;;  %v3657_v3 = vld [vmem:[%s5068_s3 + $0x28] ss:$16 sps:$4 sm:$0xff]  }
  0x43   :  { %1015 = vmatpush2.bf16.msra.mxu0 %v3609_v4  ;;  %1056 = vmatpush2.bf16.msra.mxu1 %v3612_v5  ;;  %v3660_v4 = vld [vmem:[%s5068_s3 + $0x228] ss:$16 sps:$4 sm:$0xff]   ;;  %v3665_v5 = vld [vmem:[%s5068_s3 + $0xc] ss:$16 sps:$4 sm:$0xff]  }
  0x44   :  { %1016 = vmatprep.subr.bf16.mxu0 %v3617_v6  ;;  %1057 = vmatprep.subr.bf16.mxu1 %v3620_v7  ;;  %v3668_v6 = vld [vmem:[%s5068_s3 + $0x20c] ss:$16 sps:$4 sm:$0xff]   ;;  %v3663_v7 = vld [vmem:[%s5068_s3 + $0x8] ss:$16 sps:$4 sm:$0xff]  }
  0x47   :  { %1017 = vmatpush2.bf16.msra.mxu0 %v3615_v8  ;;  %1058 = vmatpush2.bf16.msra.mxu1 %v3618_v9  ;;  %v3666_v8 = vld [vmem:[%s5068_s3 + $0x208] ss:$16 sps:$4 sm:$0xff]   ;;  %v3671_v9 = vld [vmem:[%s5068_s3 + $0x1ec] ss:$16 sps:$4 sm:$0xff]  }
  0x48   :  { %1068 = vmatprep.subr.bf16.mxu0 %v3623_v10  ;;  %1109 = vmatprep.subr.bf16.mxu1 %v3626_v11  ;;  %v3674_v10 = vld [vmem:[%s5068_s3 + $0x3ec] ss:$16 sps:$4 sm:$0xff]   ;;  %v3669_v11 = vld [vmem:[%s5068_s3 + $0x1e8] ss:$16 sps:$4 sm:$0xff]  }
  0xca   :  { %v140_v23 = vpop.f32.mrf.mxu0  ;;  %v181_v24 = vpop.f32.mrf.mxu1 }
  0xcb   :  { %v141_v25 = vadd.f32 %v140_v23, %v45_v19  ;;  %v182_v26 = vadd.f32 %v181_v24, %v53_v20  ;;  %v3680_v19 = vld [vmem:[%s5068_s3 + $0x3cc] ss:$16 sps:$4 sm:$0xff]   ;;  %v3675_v20 = vld [vmem:[%s5068_s3 + $0x1c8] ss:$16 sps:$4 sm:$0xff]  }
  0xcc   :  { %v142_v27 = vpop.f32.mrf.mxu0  ;;  %v183_v28 = vpop.f32.mrf.mxu1  ;;  %v3686_v23 = vld [vmem:[%s5068_s3 + $0x3ac] ss:$16 sps:$4 sm:$0xff]   ;;  %v3681_v24 = vld [vmem:[%s5068_s3 + $0x1a8] ss:$16 sps:$4 sm:$0xff]  }
  0xcd   :  { %v190_v29 = vmax.f32 %v182_v26, 0.0  ;;  %v143_v30 = vadd.f32 %v142_v27, %v49_v21  ;;  %v184_v31 = vadd.f32 %v183_v28, %v57_v22  ;;  %v188_v32 = vmax.f32 %v141_v25, 0.0  ;;  %v3678_v21 = vld [vmem:[%s5068_s3 + $0x3c8] ss:$16 sps:$4 sm:$0xff]   ;;  %v3683_v22 = vld [vmem:[%s5068_s3 + $0x1ac] ss:$16 sps:$4 sm:$0xff]  }
  0xce   :  { %v144_v33 = vpop.f32.mrf.mxu0  ;;  %v185_v34 = vpop.f32.mrf.mxu1  ;;  %v3684_v25 = vld [vmem:[%s5068_s3 + $0x3a8] ss:$16 sps:$4 sm:$0xff]   ;;  %v3689_v26 = vld [vmem:[%s5068_s3 + $0x18c] ss:$16 sps:$4 sm:$0xff]  }
  0xcf   :  { %v189_v35 = vmax.f32 %v143_v30, 0.0  ;;  %v191_v36 = vmax.f32 %v184_v31, 0.0  ;;  %v4004_v37 = vpack.c.bf16 %v190_v29, %v190_v29  ;;  %v4012_v44 = vpack.c.bf16 %v188_v32, %v188_v32  ;;  %v3692_v27 = vld [vmem:[%s5068_s3 + $0x38c] ss:$16 sps:$4 sm:$0xff]   ;;  %v3687_v28 = vld [vmem:[%s5068_s3 + $0x188] ss:$16 sps:$4 sm:$0xff]  }
  0xd0   :  { %v145_v38 = vpop.f32.mrf.mxu0  ;;  %v186_v39 = vpop.f32.mrf.mxu1  ;;  %v3690_v29 = vld [vmem:[%s5068_s3 + $0x388] ss:$16 sps:$4 sm:$0xff]   ;;  %v3695_v30 = vld [vmem:[%s5068_s3 + $0x16c] ss:$16 sps:$4 sm:$0xff]  }
  0xd1   :  { %v193_v40 = vpack.c.bf16 %v189_v35, %v189_v35  ;;  %v195_v41 = vpack.c.bf16 %v191_v36, %v191_v36  ;;  %v3698_v31 = vld [vmem:[%s5068_s3 + $0x36c] ss:$16 sps:$4 sm:$0xff]   ;;  %v3693_v32 = vld [vmem:[%s5068_s3 + $0x168] ss:$16 sps:$4 sm:$0xff]  }
  0xd2   :  { %v3696_v33 = vld [vmem:[%s5068_s3 + $0x368] ss:$16 sps:$4 sm:$0xff]   ;;  %v3701_v34 = vld [vmem:[%s5068_s3 + $0x14c] ss:$16 sps:$4 sm:$0xff]  }
  0xd3   :  { %1018 = vmatprep.mubr.bf16.mxu0 %v193_v40  ;;  %1059 = vmatprep.mubr.bf16.mxu1 %v195_v41  ;;  %v3704_v35 = vld [vmem:[%s5068_s3 + $0x34c] ss:$16 sps:$4 sm:$0xff]   ;;  %v3699_v36 = vld [vmem:[%s5068_s3 + $0x148] ss:$16 sps:$4 sm:$0xff]  }
  0xd4   :  { %1019 = vmatmul.mubr.bf16.vlgmr.msra.gmra.mxu0 %v4012_v44  ;;  %1060 = vmatmul.mubr.bf16.vlgmr.msra.gmra.mxu1 %v4004_v37  ;;  %v3702_v38 = vld [vmem:[%s5068_s3 + $0x348] ss:$16 sps:$4 sm:$0xff]   ;;  %v3707_v39 = vld [vmem:[%s5068_s3 + $0x12c] ss:$16 sps:$4 sm:$0xff]  }
  0xd5   :  { %1069 = vmatpush1.bf16.msra.mxu0 %v3621_v42  ;;  %1110 = vmatpush1.bf16.msra.mxu1 %v3624_v43  ;;  %v3708_v42 = vld [vmem:[%s5068_s3 + $0x328] ss:$16 sps:$4 sm:$0xff]   ;;  %v3713_v43 = vld [vmem:[%s5068_s3 + $0x10c] ss:$16 sps:$4 sm:$0xff]  }
  0xd6   :  { %1100 = vmatprep.mubr.bf16.mxu0 %v193_v40  ;;  %1141 = vmatprep.mubr.bf16.mxu1 %v195_v41  ;;  %v3710_v40 = vld [vmem:[%s5068_s3 + $0x32c] ss:$16 sps:$4 sm:$0xff]   ;;  %v3705_v41 = vld [vmem:[%s5068_s3 + $0x128] ss:$16 sps:$4 sm:$0xff]  }
  0xd7   :  { %1070 = vmatprep.subr.bf16.mxu0 %v3629_v45  ;;  %1111 = vmatprep.subr.bf16.mxu1 %v3632_v46  ;;  %v3716_v45 = vld [vmem:[%s5068_s3 + $0x30c] ss:$16 sps:$4 sm:$0xff]   ;;  %v1230_v46 = vld [vmem:[%s5070_s5 + $0x1c0] sm:$0xff] }
  0xd9   :  { %1071 = vmatpush1.bf16.msra.mxu0 %v3627_v47  ;;  %1112 = vmatpush1.bf16.msra.mxu1 %v3630_v48  ;;  %v1234_v47 = vld [vmem:[%s5070_s5 + $0x1e0] sm:$0xff]  ;;  %v3711_v48 = vld [vmem:[%s5068_s3 + $0x108] ss:$16 sps:$4 sm:$0xff]  }
  0xda   :  { %1072 = vmatprep.subr.bf16.mxu0 %v3635_v49  ;;  %1113 = vmatprep.subr.bf16.mxu1 %v3638_v50  ;;  %v3714_v49 = vld [vmem:[%s5068_s3 + $0x308] ss:$16 sps:$4 sm:$0xff]   ;;  %v3307_v50 = vcombine.high %v1230_v46, %v1234_v47 }
  0xdd   :  { %1073 = vmatpush1.bf16.msra.mxu0 %v3633_v51  ;;  %1114 = vmatpush1.bf16.msra.mxu1 %v3636_v52  ;;  %v1222_v51 = vld [vmem:[%s5070_s5 + $0x180] sm:$0xff] }
  0xde   :  { %1074 = vmatprep.subr.bf16.mxu0 %v3641_v53  ;;  %1115 = vmatprep.subr.bf16.mxu1 %v3644_v54  ;;  %v1226_v52 = vld [vmem:[%s5070_s5 + $0x1a0] sm:$0xff]  ;;  %v3306_v53 = vcombine.low %v1230_v46, %v1234_v47 }
  0xdf   :  { %v3299_v54 = vcombine.high %v1222_v51, %v1226_v52  ;;  %v1286_v47 = vld [vmem:[%s5070_s5 + $0x380] sm:$0xff] }
  0xe1   :  { %1075 = vmatpush1.bf16.msra.mxu0 %v3639_v55  ;;  %1116 = vmatpush1.bf16.msra.mxu1 %v3642_v56  ;;  %v1214_v55 = vld [vmem:[%s5070_s5 + $0x140] sm:$0xff] }
  0xe2   :  { %1076 = vmatprep.subr.bf16.mxu0 %v3647_v57  ;;  %1117 = vmatprep.subr.bf16.mxu1 %v3650_v58  ;;  %v1218_v56 = vld [vmem:[%s5070_s5 + $0x160] sm:$0xff]  ;;  %v3298_v57 = vcombine.low %v1222_v51, %v1226_v52 }
  0xe3   :  { %v3291_v58 = vcombine.high %v1214_v55, %v1218_v56 }
  0xe5   :  { %1077 = vmatpush1.bf16.msra.mxu0 %v3645_v59  ;;  %1118 = vmatpush1.bf16.msra.mxu1 %v3648_v60  ;;  %v1206_v59 = vld [vmem:[%s5070_s5 + $0x100] sm:$0xff] }
  0xe6   :  { %1078 = vmatprep.subr.bf16.mxu0 %v3653_v61  ;;  %1119 = vmatprep.subr.bf16.mxu1 %v3656_v62  ;;  %v1210_v60 = vld [vmem:[%s5070_s5 + $0x120] sm:$0xff]  ;;  %v3290_v61 = vcombine.low %v1214_v55, %v1218_v56 }
  0xe7   :  { %v3283_v62 = vcombine.high %v1206_v59, %v1210_v60  ;;  %v1278_v55 = vld [vmem:[%s5070_s5 + $0x340] sm:$0xff] }
  0xe8   :  { %v1282_v56 = vld [vmem:[%s5070_s5 + $0x360] sm:$0xff] }
  0xe9   :  { %1079 = vmatpush1.bf16.msra.mxu0 %v3651_v63  ;;  %1120 = vmatpush1.bf16.msra.mxu1 %v3654_v0  ;;  %v1358_v63 = vld [vmem:[%s5070_s5 + $0x5c0] sm:$0xff] }
  0xea   :  { %1080 = vmatprep.subr.bf16.mxu0 %v3659_v1  ;;  %1121 = vmatprep.subr.bf16.mxu1 %v3662_v2  ;;  %v1362_v0 = vld [vmem:[%s5070_s5 + $0x5e0] sm:$0xff]  ;;  %v3282_v1 = vcombine.low %v1206_v59, %v1210_v60 }
  0xeb   :  { %v3434_v2 = vcombine.low %v1358_v63, %v1362_v0 }
  0xed   :  { %1081 = vmatpush1.bf16.msra.mxu0 %v3657_v3  ;;  %1122 = vmatpush1.bf16.msra.mxu1 %v3660_v4  ;;  %v3435_v3 = vcombine.high %v1358_v63, %v1362_v0  ;;  %v4237_v4 = vld [vmem:[%s5070_s5 + $0x1c8] sm:$0xff]  ;;  %v1302_v63 = vld [vmem:[%s5070_s5 + $0x400] sm:$0xff] }
  0xee   :  { %1082 = vmatprep.subr.bf16.mxu0 %v3665_v5  ;;  %1123 = vmatprep.subr.bf16.mxu1 %v3668_v6  ;;  %v4242_v5 = vld [vmem:[%s5070_s5 + $0x1e8] sm:$0xff]  ;;  %v1306_v0 = vld [vmem:[%s5070_s5 + $0x420] sm:$0xff] }
  0xf1   :  { %1083 = vmatpush1.bf16.msra.mxu0 %v3663_v7  ;;  %1124 = vmatpush1.bf16.msra.mxu1 %v3666_v8  ;;  %v1190_v7 = vld [vmem:[%s5070_s5 + $0x80] sm:$0xff] }
  0xf2   :  { %1084 = vmatprep.subr.bf16.mxu0 %v3671_v9  ;;  %1125 = vmatprep.subr.bf16.mxu1 %v3674_v10  ;;  %v1194_v8 = vld [vmem:[%s5070_s5 + $0xa0] sm:$0xff]  ;;  %v3308_v9 = vcombine.low %v4237_v4, %v4242_v5 }
  0xf3   :  { %v1350_v10 = vld [vmem:[%s5070_s5 + $0x580] sm:$0xff] }
  0xf5   :  { %1085 = vmatpush2.bf16.msra.mxu0 %v3669_v11  ;;  %1126 = vmatpush2.bf16.msra.mxu1 %v3672_v12  ;;  %v1354_v11 = vld [vmem:[%s5070_s5 + $0x5a0] sm:$0xff] }
  0xf6   :  { %1086 = vmatprep.subr.bf16.mxu0 %v3677_v16  ;;  %1127 = vmatprep.subr.bf16.mxu1 %v3680_v19  ;;  %v3426_v16 = vcombine.low %v1350_v10, %v1354_v11  ;;  %v3427_v19 = vcombine.high %v1350_v10, %v1354_v11  ;;  %v1422_v10 = vld [vmem:[%s5070_s5 + $0x7c0] sm:$0xff] }
  0xf7   :  { %v1426_v11 = vld [vmem:[%s5070_s5 + $0x7e0] sm:$0xff] }
  0xf9   :  { %1087 = vmatpush2.bf16.msra.mxu0 %v3675_v20  ;;  %1128 = vmatpush2.bf16.msra.mxu1 %v3678_v21  ;;  %v3267_v20 = vcombine.high %v1190_v7, %v1194_v8  ;;  %v1182_v21 = vld [vmem:[%s5070_s5 + $0x40] sm:$0xff] }
  0xfa   :  { %1088 = vmatprep.subr.bf16.mxu0 %v3683_v22  ;;  %1129 = vmatprep.subr.bf16.mxu1 %v3686_v23  ;;  %v1186_v22 = vld [vmem:[%s5070_s5 + $0x60] sm:$0xff] }
  0xfb   :  { %v1342_v23 = vld [vmem:[%s5070_s5 + $0x540] sm:$0xff] }
  0xfd   :  { %1089 = vmatpush2.bf16.msra.mxu0 %v3681_v24  ;;  %1130 = vmatpush2.bf16.msra.mxu1 %v3684_v25  ;;  %v1346_v24 = vld [vmem:[%s5070_s5 + $0x560] sm:$0xff]  ;;  %v3266_v25 = vcombine.low %v1190_v7, %v1194_v8 }
  0xfe   :  { %1090 = vmatprep.subr.bf16.mxu0 %v3689_v26  ;;  %1131 = vmatprep.subr.bf16.mxu1 %v3692_v27  ;;  %v3418_v26 = vcombine.low %v1342_v23, %v1346_v24  ;;  %v3419_v27 = vcombine.high %v1342_v23, %v1346_v24  ;;  %v1262_v7 = vld [vmem:[%s5070_s5 + $0x2c0] sm:$0xff] }
  0xff   :  { %v1266_v8 = vld [vmem:[%s5070_s5 + $0x2e0] sm:$0xff] }
 0x100   :  { %v1414_v23 = vld [vmem:[%s5070_s5 + $0x780] sm:$0xff] }
 0x101   :  { %1091 = vmatpush2.bf16.msra.mxu0 %v3687_v28  ;;  %1132 = vmatpush2.bf16.msra.mxu1 %v3690_v29  ;;  %v3259_v28 = vcombine.high %v1182_v21, %v1186_v22  ;;  %v1174_v29 = vld [vmem:[%s5070_s5] sm:$0xff] }
 0x102   :  { %1092 = vmatprep.subr.bf16.mxu0 %v3695_v30  ;;  %1133 = vmatprep.subr.bf16.mxu1 %v3698_v31  ;;  %v1178_v30 = vld [vmem:[%s5070_s5 + $0x20] sm:$0xff] }
 0x103   :  { %v1334_v31 = vld [vmem:[%s5070_s5 + $0x500] sm:$0xff] }
 0x104   :  { %v1418_v24 = vld [vmem:[%s5070_s5 + $0x7a0] sm:$0xff] }
 0x105   :  { %1093 = vmatpush2.bf16.msra.mxu0 %v3693_v32  ;;  %1134 = vmatpush2.bf16.msra.mxu1 %v3696_v33  ;;  %v1338_v32 = vld [vmem:[%s5070_s5 + $0x520] sm:$0xff]  ;;  %v3258_v33 = vcombine.low %v1182_v21, %v1186_v22 }
 0x106   :  { %1094 = vmatprep.subr.bf16.mxu0 %v3701_v34  ;;  %1135 = vmatprep.subr.bf16.mxu1 %v3704_v35  ;;  %v3410_v34 = vcombine.low %v1334_v31, %v1338_v32  ;;  %v3411_v35 = vcombine.high %v1334_v31, %v1338_v32  ;;  %v1254_v21 = vld [vmem:[%s5070_s5 + $0x280] sm:$0xff] }
 0x107   :  { %v1258_v22 = vld [vmem:[%s5070_s5 + $0x2a0] sm:$0xff] }
 0x108   :  { %v1406_v31 = vld [vmem:[%s5070_s5 + $0x740] sm:$0xff] }
 0x109   :  { %1095 = vmatpush2.bf16.msra.mxu0 %v3699_v36  ;;  %1136 = vmatpush2.bf16.msra.mxu1 %v3702_v38  ;;  %v3251_v36 = vcombine.high %v1174_v29, %v1178_v30  ;;  %v1294_v38 = vld [vmem:[%s5070_s5 + $0x3c0] sm:$0xff] }
 0x10a   :  { %1096 = vmatprep.subr.bf16.mxu0 %v3707_v39  ;;  %1137 = vmatprep.subr.bf16.mxu1 %v3710_v40  ;;  %v1298_v39 = vld [vmem:[%s5070_s5 + $0x3e0] sm:$0xff] }
 0x10b   :  { %v1326_v40 = vld [vmem:[%s5070_s5 + $0x4c0] sm:$0xff]  ;;  %v3371_v46 = vcombine.high %v1294_v38, %v1298_v39  ;;  %v3370_v51 = vcombine.low %v1294_v38, %v1298_v39 }
 0x10c   :  { %v1410_v32 = vld [vmem:[%s5070_s5 + $0x760] sm:$0xff] }
 0x10d   :  { %1097 = vmatpush2.bf16.msra.mxu0 %v3705_v41  ;;  %1138 = vmatpush2.bf16.msra.mxu1 %v3708_v42  ;;  %v1330_v41 = vld [vmem:[%s5070_s5 + $0x4e0] sm:$0xff]  ;;  %v3250_v42 = vcombine.low %v1174_v29, %v1178_v30 }
 0x10e   :  { %1098 = vmatprep.subr.bf16.mxu0 %v3713_v43  ;;  %1139 = vmatprep.subr.bf16.mxu1 %v3716_v45  ;;  %v3402_v43 = vcombine.low %v1326_v40, %v1330_v41  ;;  %v3403_v45 = vcombine.high %v1326_v40, %v1330_v41  ;;  %v1246_v29 = vld [vmem:[%s5070_s5 + $0x240] sm:$0xff] }
 0x10f   :  { %v1250_v30 = vld [vmem:[%s5070_s5 + $0x260] sm:$0xff] }
 0x110   :  { %v1238_v38 = vld [vmem:[%s5070_s5 + $0x200] sm:$0xff] }
 0x111   :  { %1099 = vmatpush2.bf16.msra.mxu0 %v3711_v48  ;;  %1140 = vmatpush2.bf16.msra.mxu1 %v3714_v49  ;;  %v1290_v48 = vld [vmem:[%s5070_s5 + $0x3a0] sm:$0xff] }
 0x112   :  { %2766 = vmatprep.subr.bf16.mxu0 %v3307_v50  ;;  %2807 = vmatprep.subr.bf16.mxu1 %v3435_v3  ;;  %v1318_v49 = vld [vmem:[%s5070_s5 + $0x480] sm:$0xff]  ;;  %v3362_v59 = vcombine.low %v1286_v47, %v1290_v48  ;;  %v3379_v3 = vcombine.high %v1302_v63, %v1306_v0 }
 0x113   :  { %v1322_v50 = vld [vmem:[%s5070_s5 + $0x4a0] sm:$0xff] }
 0x114   :  { %1101 = vmatmul.mubr.bf16.vlgmr.msra.gmra.mxu0 %v4012_v44  ;;  %1142 = vmatmul.mubr.bf16.vlgmr.msra.gmra.mxu1 %v4004_v37  ;;  %v1198_v37 = vld [vmem:[%s5070_s5 + $0xc0] sm:$0xff]  ;;  %v3394_v52 = vcombine.low %v1318_v49, %v1322_v50 }
 0x115   :  { %2767 = vmatpush1.bf16.msra.mxu0 %v3306_v53  ;;  %v1202_v44 = vld [vmem:[%s5070_s5 + $0xe0] sm:$0xff]  ;;  %2808 = vmatpush1.bf16.msra.mxu1 %v3434_v2  ;;  %v3395_v53 = vcombine.high %v1318_v49, %v1322_v50  ;;  %v3378_v2 = vcombine.low %v1302_v63, %v1306_v0  ;;  %v4407_v63 = vld [vmem:[%s5070_s5 + $0x5c8] sm:$0xff] }
 0x116   :  { %2768 = vmatprep.subr.bf16.mxu0 %v3299_v54  ;;  %v3275_v6 = vcombine.high %v1198_v37, %v1202_v44  ;;  %v3274_v12 = vcombine.low %v1198_v37, %v1202_v44  ;;  %2809 = vmatprep.subr.bf16.mxu1 %v3427_v19  ;;  %v3363_v54 = vcombine.high %v1286_v47, %v1290_v48  ;;  %v1270_v37 = vld [vmem:[%s5070_s5 + $0x300] sm:$0xff]  ;;  %v4412_v0 = vld [vmem:[%s5070_s5 + $0x5e8] sm:$0xff] }
 0x117   :  { %v1274_v44 = vld [vmem:[%s5070_s5 + $0x320] sm:$0xff]  ;;  %v3499_v19 = vcombine.high %v1422_v10, %v1426_v11 }
 0x118   :  { %v1242_v39 = vld [vmem:[%s5070_s5 + $0x220] sm:$0xff] }
 0x119   :  { %2769 = vmatpush1.bf16.msra.mxu0 %v3298_v57  ;;  %2810 = vmatpush1.bf16.msra.mxu1 %v3426_v16  ;;  %v1310_v57 = vld [vmem:[%s5070_s5 + $0x440] sm:$0xff]  ;;  %v3498_v16 = vcombine.low %v1422_v10, %v1426_v11  ;;  %v3314_v49 = vcombine.low %v1238_v38, %v1242_v39 }
 0x11a   :  { %2770 = vmatprep.subr.bf16.mxu0 %v3291_v58  ;;  %2811 = vmatprep.subr.bf16.mxu1 %v3419_v27  ;;  %v1314_v58 = vld [vmem:[%s5070_s5 + $0x460] sm:$0xff]  ;;  %v3491_v27 = vcombine.high %v1414_v23, %v1418_v24 }
 0x11b   :  { %v3386_v60 = vcombine.low %v1310_v57, %v1314_v58  ;;  %v1398_v40 = vld [vmem:[%s5070_s5 + $0x700] sm:$0xff] }
 0x11c   :  { %v1402_v41 = vld [vmem:[%s5070_s5 + $0x720] sm:$0xff] }
 0x11d   :  { %2771 = vmatpush1.bf16.msra.mxu0 %v3290_v61  ;;  %2812 = vmatpush1.bf16.msra.mxu1 %v3418_v26  ;;  %v3387_v61 = vcombine.high %v1310_v57, %v1314_v58  ;;  %v3490_v26 = vcombine.low %v1414_v23, %v1418_v24  ;;  %v1390_v47 = vld [vmem:[%s5070_s5 + $0x6c0] sm:$0xff] }
 0x11e   :  { %2772 = vmatprep.subr.bf16.mxu0 %v3283_v62  ;;  %2813 = vmatprep.subr.bf16.mxu1 %v3411_v35  ;;  %v3355_v62 = vcombine.high %v1278_v55, %v1282_v56  ;;  %v3483_v35 = vcombine.high %v1406_v31, %v1410_v32  ;;  %v1394_v48 = vld [vmem:[%s5070_s5 + $0x6e0] sm:$0xff] }
 0x11f   :  { %v3466_v50 = vcombine.low %v1390_v47, %v1394_v48  ;;  %v1374_v57 = vld [vmem:[%s5070_s5 + $0x640] sm:$0xff] }
 0x120   :  { %v1378_v58 = vld [vmem:[%s5070_s5 + $0x660] sm:$0xff] }
 0x121   :  { %2773 = vmatpush1.bf16.msra.mxu0 %v3282_v1  ;;  %2814 = vmatpush1.bf16.msra.mxu1 %v3410_v34  ;;  %v3354_v1 = vcombine.low %v1278_v55, %v1282_v56  ;;  %v3482_v34 = vcombine.low %v1406_v31, %v1410_v32 }
 0x122   :  { %2774 = vmatprep.subr.bf16.mxu0 %v3275_v6  ;;  %2815 = vmatprep.subr.bf16.mxu1 %v3403_v45  ;;  %v3347_v6 = vcombine.high %v1270_v37, %v1274_v44  ;;  %v3475_v45 = vcombine.high %v1398_v40, %v1402_v41 }
 0x125   :  { %2775 = vmatpush1.bf16.msra.mxu0 %v3274_v12  ;;  %2816 = vmatpush1.bf16.msra.mxu1 %v3402_v43  ;;  %v3346_v12 = vcombine.low %v1270_v37, %v1274_v44  ;;  %v3474_v43 = vcombine.low %v1398_v40, %v1402_v41 }
 0x126   :  { %2776 = vmatprep.subr.bf16.mxu0 %v3267_v20  ;;  %2817 = vmatprep.subr.bf16.mxu1 %v3395_v53  ;;  %v3339_v20 = vcombine.high %v1262_v7, %v1266_v8  ;;  %v1382_v53 = vld [vmem:[%s5070_s5 + $0x680] sm:$0xff] }
 0x129   :  { %2777 = vmatpush1.bf16.msra.mxu0 %v3266_v25  ;;  %2818 = vmatpush1.bf16.msra.mxu1 %v3394_v52  ;;  %v3338_v25 = vcombine.low %v1262_v7, %v1266_v8  ;;  %v3309_v52 = vcombine.high %v4237_v4, %v4242_v5  ;;  %v1199_v4 = vld [vmem:[%s5070_s5 + $0xc8] sm:$0xff] }
 0x12a   :  { %2778 = vmatprep.subr.bf16.mxu0 %v3259_v28  ;;  %2819 = vmatprep.subr.bf16.mxu1 %v3387_v61  ;;  %v3331_v28 = vcombine.high %v1254_v21, %v1258_v22  ;;  %v1366_v61 = vld [vmem:[%s5070_s5 + $0x600] sm:$0xff]  ;;  %v1203_v5 = vld [vmem:[%s5070_s5 + $0xe8] sm:$0xff] }
 0x12d   :  { %2779 = vmatpush1.bf16.msra.mxu0 %v3258_v33  ;;  %2820 = vmatpush1.bf16.msra.mxu1 %v3386_v60  ;;  %v3330_v33 = vcombine.low %v1254_v21, %v1258_v22  ;;  %v3450_v60 = vcombine.low %v1374_v57, %v1378_v58 }
 0x12e   :  { %2780 = vmatprep.subr.bf16.mxu0 %v3251_v36  ;;  %2821 = vmatprep.subr.bf16.mxu1 %v3379_v3  ;;  %v3323_v36 = vcombine.high %v1246_v29, %v1250_v30  ;;  %v4421_v3 = vld [vmem:[%s5071_s4] sm:$0xf] }
 0x12f   :  { %v333_v7 = vrot.slane %v4421_v3, %v3995_v17 }
 0x131   :  { %2781 = vmatpush1.bf16.msra.mxu0 %v3250_v42  ;;  %2822 = vmatpush1.bf16.msra.mxu1 %v3378_v2  ;;  %v3322_v42 = vcombine.low %v1246_v29, %v1250_v30  ;;  %v3436_v2 = vcombine.low %v4407_v63, %v4412_v0  ;;  %v1227_v29 = vld [vmem:[%s5070_s5 + $0x1a8] sm:$0xff] }
 0x132   :  { %2782 = vmatprep.subr.bf16.mxu0 %v3371_v46  ;;  %2823 = vmatprep.subr.bf16.mxu1 %v3499_v19  ;;  %v3315_v46 = vcombine.high %v1238_v38, %v1242_v39  ;;  %v1207_v38 = vld [vmem:[%s5070_s5 + $0x108] sm:$0xff] }
 0x133   :  { %v1211_v39 = vld [vmem:[%s5070_s5 + $0x128] sm:$0xff] }
 0x134   :  { %v3285_v41 = vcombine.high %v1207_v38, %v1211_v39 }
 0x135   :  { %2783 = vmatpush2.bf16.msra.mxu0 %v3370_v51  ;;  %2824 = vmatpush2.bf16.msra.mxu1 %v3498_v16  ;;  %v3467_v51 = vcombine.high %v1390_v47, %v1394_v48  ;;  %v1183_v48 = vld [vmem:[%s5070_s5 + $0x48] sm:$0xff] }
 0x136   :  { %2784 = vmatprep.subr.bf16.mxu0 %v3363_v54  ;;  %2825 = vmatprep.subr.bf16.mxu1 %v3491_v27  ;;  %v1386_v54 = vld [vmem:[%s5070_s5 + $0x6a0] sm:$0xff] }
 0x137   :  { %v3458_v55 = vcombine.low %v1382_v53, %v1386_v54  ;;  %v3459_v56 = vcombine.high %v1382_v53, %v1386_v54  ;;  %v1179_v53 = vld [vmem:[%s5070_s5 + $0x28] sm:$0xff] }
 0x139   :  { %2785 = vmatpush2.bf16.msra.mxu0 %v3362_v59  ;;  %2826 = vmatpush2.bf16.msra.mxu1 %v3490_v26  ;;  %v3451_v59 = vcombine.high %v1374_v57, %v1378_v58  ;;  %v1299_v57 = vld [vmem:[%s5070_s5 + $0x3e8] sm:$0xff] }
 0x13a   :  { %2786 = vmatprep.subr.bf16.mxu0 %v3355_v62  ;;  %2827 = vmatprep.subr.bf16.mxu1 %v3483_v35  ;;  %v1370_v62 = vld [vmem:[%s5070_s5 + $0x620] sm:$0xff] }
 0x13b   :  { %v3443_v37 = vcombine.high %v1366_v61, %v1370_v62  ;;  %v3442_v44 = vcombine.low %v1366_v61, %v1370_v62  ;;  %v1291_v61 = vld [vmem:[%s5070_s5 + $0x3a8] sm:$0xff] }
 0x13d   :  { %2787 = vmatpush2.bf16.msra.mxu0 %v3354_v1  ;;  %2828 = vmatpush2.bf16.msra.mxu1 %v3482_v34  ;;  %v3437_v1 = vcombine.high %v4407_v63, %v4412_v0  ;;  %v1219_v34 = vld [vmem:[%s5070_s5 + $0x168] sm:$0xff]  ;;  %v1208_v0 = vld [vmem:[%s5070_s5 + $0x110] sm:$0xff] }
 0x13e   :  { %2788 = vmatprep.subr.bf16.mxu0 %v3347_v6  ;;  %2829 = vmatprep.subr.bf16.mxu1 %v3475_v45  ;;  %v329_v6 = vrot.slane %v4421_v3, %v3986_v14  ;;  %v1195_v45 = vld [vmem:[%s5070_s5 + $0xa8] sm:$0xff] }
 0x13f   :  { %v1339_v63 = vld [vmem:[%s5070_s5 + $0x528] sm:$0xff] }
 0x141   :  { %2789 = vmatpush2.bf16.msra.mxu0 %v3346_v12  ;;  %2830 = vmatpush2.bf16.msra.mxu1 %v3474_v43  ;;  %v1191_v43 = vld [vmem:[%s5070_s5 + $0x88] sm:$0xff] }
 0x142   :  { %2790 = vmatprep.subr.bf16.mxu0 %v3339_v20  ;;  %2831 = vmatprep.subr.bf16.mxu1 %v3467_v51  ;;  %v3269_v47 = vcombine.high %v1191_v43, %v1195_v45 }
 0x145   :  { %2791 = vmatpush2.bf16.msra.mxu0 %v3338_v25  ;;  %2832 = vmatpush2.bf16.msra.mxu1 %v3466_v50  ;;  %v3268_v50 = vcombine.low %v1191_v43, %v1195_v45  ;;  %v1236_v43 = vld [vmem:[%s5070_s5 + $0x1f0] sm:$0xff] }
 0x146   :  { %2792 = vmatprep.subr.bf16.mxu0 %v3331_v28  ;;  %2833 = vmatprep.subr.bf16.mxu1 %v3459_v56  ;;  %v1223_v28 = vld [vmem:[%s5070_s5 + $0x188] sm:$0xff] }
 0x147   :  { %v3301_v32 = vcombine.high %v1223_v28, %v1227_v29  ;;  %v3300_v35 = vcombine.low %v1223_v28, %v1227_v29  ;;  %v1295_v56 = vld [vmem:[%s5070_s5 + $0x3c8] sm:$0xff]  ;;  %v337_v28 = vrot.slane %v4421_v3, %v3989_v15 }
 0x148   :  { %v3372_v62 = vcombine.low %v1295_v56, %v1299_v57 }
 0x149   :  { %2793 = vmatpush2.bf16.msra.mxu0 %v3330_v33  ;;  %2834 = vmatpush2.bf16.msra.mxu1 %v3458_v55  ;;  %v1215_v33 = vld [vmem:[%s5070_s5 + $0x148] sm:$0xff] }
 0x14a   :  { %2794 = vmatprep.subr.bf16.mxu0 %v3323_v36  ;;  %2835 = vmatprep.subr.bf16.mxu1 %v3451_v59  ;;  %v3293_v36 = vcombine.high %v1215_v33, %v1219_v34  ;;  %v3292_v40 = vcombine.low %v1215_v33, %v1219_v34  ;;  %v3373_v59 = vcombine.high %v1295_v56, %v1299_v57  ;;  %v1239_v34 = vld [vmem:[%s5070_s5 + $0x208] sm:$0xff]  ;;  %v1224_v56 = vld [vmem:[%s5070_s5 + $0x190] sm:$0xff] }
 0x14b   :  { %v341_v33 = vrot.slane %v4421_v3, %v3998_v18  ;;  %v1232_v3 = vld [vmem:[%s5070_s5 + $0x1d0] sm:$0xff] }
 0x14c   :  { %v1228_v57 = vld [vmem:[%s5070_s5 + $0x1b0] sm:$0xff] }
 0x14d   :  { %2795 = vmatpush2.bf16.msra.mxu0 %v3322_v42  ;;  %2836 = vmatpush2.bf16.msra.mxu1 %v3450_v60  ;;  %v3277_v42 = vcombine.high %v1199_v4, %v1203_v5  ;;  %v1287_v60 = vld [vmem:[%s5070_s5 + $0x388] sm:$0xff] }
 0x14e   :  { %2796 = vmatprep.subr.bf16.mxu0 %v3315_v46  ;;  %2837 = vmatprep.subr.bf16.mxu1 %v3443_v37  ;;  %v3276_v46 = vcombine.low %v1199_v4, %v1203_v5  ;;  %v3365_v37 = vcombine.high %v1287_v60, %v1291_v61 }
 0x151   :  { %2797 = vmatpush2.bf16.msra.mxu0 %v3314_v49  ;;  %2838 = vmatpush2.bf16.msra.mxu1 %v3442_v44  ;;  %v1187_v49 = vld [vmem:[%s5070_s5 + $0x68] sm:$0xff] }
 0x152   :  { %2848 = vmatprep.subr.bf16.mxu0 %v3309_v52  ;;  %2889 = vmatprep.subr.bf16.mxu1 %v3437_v1  ;;  %v3261_v51 = vcombine.high %v1183_v48, %v1187_v49  ;;  %v1175_v52 = vld [vmem:[%s5070_s5 + $0x8] sm:$0xff]  ;;  %v3260_v54 = vcombine.low %v1183_v48, %v1187_v49 }
 0x153   :  { %v3253_v55 = vcombine.high %v1175_v52, %v1179_v53  ;;  %v3252_v58 = vcombine.low %v1175_v52, %v1179_v53  ;;  %v1279_v44 = vld [vmem:[%s5070_s5 + $0x348] sm:$0xff]  ;;  %v3311_v52 = vcombine.high %v1232_v3, %v1236_v43 }
 0x154   :  { %v1283_v1 = vld [vmem:[%s5070_s5 + $0x368] sm:$0xff] }
 0x194   :  { %v1020_v8 = vpop.f32.mrf.mxu0  ;;  %v1061_v10 = vpop.f32.mrf.mxu1 }
 0x195   :  { %v1021_v11 = vadd.f32 %v1020_v8, %v329_v6  ;;  %v3364_v6 = vcombine.low %v1287_v60, %v1291_v61  ;;  %v1271_v8 = vld [vmem:[%s5070_s5 + $0x308] sm:$0xff]  ;;  %v3310_v60 = vcombine.low %v1232_v3, %v1236_v43 }
 0x196   :  { %v1022_v12 = vpop.f32.mrf.mxu0  ;;  %v1063_v16 = vpop.f32.mrf.mxu1 }
 0x197   :  { %v1062_v19 = vadd.f32 %v1061_v10, %v1021_v11  ;;  %v1023_v20 = vadd.f32 %v1022_v12, %v333_v7  ;;  %v3357_v7 = vcombine.high %v1279_v44, %v1283_v1  ;;  %v1275_v10 = vld [vmem:[%s5070_s5 + $0x328] sm:$0xff]  ;;  %v3356_v11 = vcombine.low %v1279_v44, %v1283_v1  ;;  %v1216_v1 = vld [vmem:[%s5070_s5 + $0x150] sm:$0xff] }
 0x198   :  { %v1024_v21 = vpop.f32.mrf.mxu0  ;;  %v1065_v22 = vpop.f32.mrf.mxu1  ;;  %v3349_v12 = vcombine.high %v1271_v8, %v1275_v10  ;;  %v1347_v44 = vld [vmem:[%s5070_s5 + $0x568] sm:$0xff] }
 0x199   :  { %v1064_v23 = vadd.f32 %v1063_v16, %v1023_v20  ;;  %v1150_v24 = vmax.f32 %v1062_v19, 0.0  ;;  %v1263_v16 = vld [vmem:[%s5070_s5 + $0x2c8] sm:$0xff]  ;;  %v3348_v20 = vcombine.low %v1271_v8, %v1275_v10  ;;  %v3302_v8 = vcombine.low %v1224_v56, %v1228_v57 }
 0x19a   :  { %v1025_v25 = vpop.f32.mrf.mxu0  ;;  %v1066_v26 = vpop.f32.mrf.mxu1  ;;  %v1267_v19 = vld [vmem:[%s5070_s5 + $0x2e8] sm:$0xff] }
 0x19b   :  { %v1151_v27 = vmax.f32 %v1064_v23, 0.0  ;;  %v4435_v31 = vpack.c.bf16 %v1150_v24, %v1150_v24  ;;  %v3341_v21 = vcombine.high %v1263_v16, %v1267_v19  ;;  %v1255_v22 = vld [vmem:[%s5070_s5 + $0x288] sm:$0xff]  ;;  %v3340_v24 = vcombine.low %v1263_v16, %v1267_v19 }
 0x19c   :  { %v1259_v23 = vld [vmem:[%s5070_s5 + $0x2a8] sm:$0xff] }
 0x19d   :  { %v4433_v30 = vpack.c.bf16 %v1151_v27, %v1151_v27  ;;  %v3333_v25 = vcombine.high %v1255_v22, %v1259_v23  ;;  %v1247_v26 = vld [vmem:[%s5070_s5 + $0x248] sm:$0xff]  ;;  %v3332_v29 = vcombine.low %v1255_v22, %v1259_v23 }
 0x19e   :  { %v1251_v27 = vld [vmem:[%s5070_s5 + $0x268] sm:$0xff] }
 0x19f   :  { %2798 = vmatprep.mubr.bf16.mxu0 %v4433_v30  ;;  %v1327_v22 = vld [vmem:[%s5070_s5 + $0x4c8] sm:$0xff] }
 0x1a0   :  { %2799 = vmatmul.mubr.bf16.vlgmr.msra.gmra.mxu0 %v4435_v31  ;;  %v1331_v23 = vld [vmem:[%s5070_s5 + $0x4e8] sm:$0xff] }
 0x1a1   :  { %2849 = vmatpush1.bf16.msra.mxu0 %v3308_v9  ;;  %2880 = vmatprep.mubr.bf16.mxu0 %v4433_v30  ;;  %v3284_v9 = vcombine.low %v1207_v38, %v1211_v39 }
 0x1a2   :  { %2850 = vmatprep.subr.bf16.mxu0 %v3301_v32  ;;  %v3325_v32 = vcombine.high %v1247_v26, %v1251_v27 }
 0x1a5   :  { %2851 = vmatpush1.bf16.msra.mxu0 %v3300_v35  ;;  %v1243_v35 = vld [vmem:[%s5070_s5 + $0x228] sm:$0xff] }
 0x1a6   :  { %2852 = vmatprep.subr.bf16.mxu0 %v3293_v36  ;;  %v3317_v5 = vcombine.high %v1239_v34, %v1243_v35  ;;  %v3316_v48 = vcombine.low %v1239_v34, %v1243_v35  ;;  %v1192_v34 = vld [vmem:[%s5070_s5 + $0x90] sm:$0xff] }
 0x1a7   :  { %v1196_v35 = vld [vmem:[%s5070_s5 + $0xb0] sm:$0xff] }
 0x1a8   :  { %v3270_v3 = vcombine.low %v1192_v34, %v1196_v35 }
 0x1a9   :  { %2853 = vmatpush1.bf16.msra.mxu0 %v3292_v40  ;;  %v3324_v40 = vcombine.low %v1247_v26, %v1251_v27 }
 0x1aa   :  { %2854 = vmatprep.subr.bf16.mxu0 %v3285_v41 }
 0x1ad   :  { %2855 = vmatpush1.bf16.msra.mxu0 %v3284_v9 }
 0x1ae   :  { %2856 = vmatprep.subr.bf16.mxu0 %v3277_v42 }
 0x1b1   :  { %2857 = vmatpush1.bf16.msra.mxu0 %v3276_v46 }
 0x1b2   :  { %2858 = vmatprep.subr.bf16.mxu0 %v3269_v47 }
 0x1b5   :  { %2859 = vmatpush1.bf16.msra.mxu0 %v3268_v50 }
 0x1b6   :  { %2860 = vmatprep.subr.bf16.mxu0 %v3261_v51 }
 0x1b9   :  { %2861 = vmatpush1.bf16.msra.mxu0 %v3260_v54  ;;  %v1351_v54 = vld [vmem:[%s5070_s5 + $0x588] sm:$0xff] }
 0x1ba   :  { %2862 = vmatprep.subr.bf16.mxu0 %v3253_v55  ;;  %v1355_v55 = vld [vmem:[%s5070_s5 + $0x5a8] sm:$0xff] }
 0x1bb   :  { %v3429_v61 = vcombine.high %v1351_v54, %v1355_v55 }
 0x1bd   :  { %2863 = vmatpush1.bf16.msra.mxu0 %v3252_v58 }
 0x1be   :  { %2864 = vmatprep.subr.bf16.mxu0 %v3373_v59 }
 0x1c1   :  { %2865 = vmatpush2.bf16.msra.mxu0 %v3372_v62  ;;  %v3303_v62 = vcombine.high %v1224_v56, %v1228_v57  ;;  %v1296_v56 = vld [vmem:[%s5070_s5 + $0x3d0] sm:$0xff] }
 0x1c2   :  { %2866 = vmatprep.subr.bf16.mxu0 %v3365_v37  ;;  %v1343_v37 = vld [vmem:[%s5070_s5 + $0x548] sm:$0xff]  ;;  %v1300_v57 = vld [vmem:[%s5070_s5 + $0x3f0] sm:$0xff] }
 0x1c3   :  { %v3421_v10 = vcombine.high %v1343_v37, %v1347_v44  ;;  %v3420_v16 = vcombine.low %v1343_v37, %v1347_v44  ;;  %v3375_v37 = vcombine.high %v1296_v56, %v1300_v57  ;;  %v1415_v44 = vld [vmem:[%s5070_s5 + $0x788] sm:$0xff] }
 0x1c5   :  { %2867 = vmatpush2.bf16.msra.mxu0 %v3364_v6  ;;  %v1220_v6 = vld [vmem:[%s5070_s5 + $0x170] sm:$0xff] }
 0x1c6   :  { %2868 = vmatprep.subr.bf16.mxu0 %v3357_v7  ;;  %v3428_v7 = vcombine.low %v1351_v54, %v1355_v55  ;;  %v3294_v19 = vcombine.low %v1216_v1, %v1220_v6  ;;  %v1423_v54 = vld [vmem:[%s5070_s5 + $0x7c8] sm:$0xff] }
 0x1c7   :  { %v1427_v55 = vld [vmem:[%s5070_s5 + $0x7e8] sm:$0xff] }
 0x1c9   :  { %2869 = vmatpush2.bf16.msra.mxu0 %v3356_v11  ;;  %v3295_v11 = vcombine.high %v1216_v1, %v1220_v6  ;;  %v1419_v1 = vld [vmem:[%s5070_s5 + $0x7a8] sm:$0xff]  ;;  %v1288_v6 = vld [vmem:[%s5070_s5 + $0x390] sm:$0xff] }
 0x1ca   :  { %2870 = vmatprep.subr.bf16.mxu0 %v3349_v12  ;;  %v1335_v12 = vld [vmem:[%s5070_s5 + $0x508] sm:$0xff] }
 0x1cb   :  { %v3412_v26 = vcombine.low %v1335_v12, %v1339_v63 }
 0x1cd   :  { %2871 = vmatpush2.bf16.msra.mxu0 %v3348_v20  ;;  %v3413_v20 = vcombine.high %v1335_v12, %v1339_v63  ;;  %v1407_v63 = vld [vmem:[%s5070_s5 + $0x748] sm:$0xff] }
 0x1ce   :  { %2872 = vmatprep.subr.bf16.mxu0 %v3341_v21 }
 0x1d1   :  { %2873 = vmatpush2.bf16.msra.mxu0 %v3340_v24  ;;  %v1200_v24 = vld [vmem:[%s5070_s5 + $0xd0] sm:$0xff] }
 0x1d2   :  { %2874 = vmatprep.subr.bf16.mxu0 %v3333_v25  ;;  %v1204_v25 = vld [vmem:[%s5070_s5 + $0xf0] sm:$0xff] }
 0x1d4   :  { %v1102_v36 = vpop.f32.mrf.mxu0  ;;  %v1143_v38 = vpop.f32.mrf.mxu1 }
 0x1d5   :  { %v1103_v39 = vadd.f32 %v1102_v36, %v337_v28  ;;  %2875 = vmatpush2.bf16.msra.mxu0 %v3332_v29  ;;  %v3405_v28 = vcombine.high %v1327_v22, %v1331_v23  ;;  %v3279_v29 = vcombine.high %v1200_v24, %v1204_v25  ;;  %v3404_v36 = vcombine.low %v1327_v22, %v1331_v23  ;;  %v1399_v23 = vld [vmem:[%s5070_s5 + $0x708] sm:$0xff] }
 0x1d6   :  { %v1104_v41 = vpop.f32.mrf.mxu0  ;;  %v1145_v4 = vpop.f32.mrf.mxu1  ;;  %2876 = vmatprep.subr.bf16.mxu0 %v3325_v32  ;;  %v1319_v32 = vld [vmem:[%s5070_s5 + $0x488] sm:$0xff] }
 0x1d7   :  { %v1144_v9 = vadd.f32 %v1143_v38, %v1103_v39  ;;  %v1105_v42 = vadd.f32 %v1104_v41, %v341_v33  ;;  %v1323_v33 = vld [vmem:[%s5070_s5 + $0x4a8] sm:$0xff]  ;;  %v3278_v38 = vcombine.low %v1200_v24, %v1204_v25  ;;  %v1272_v25 = vld [vmem:[%s5070_s5 + $0x310] sm:$0xff] }
 0x1d8   :  { %v1106_v45 = vpop.f32.mrf.mxu0  ;;  %v1147_v46 = vpop.f32.mrf.mxu1  ;;  %v3397_v39 = vcombine.high %v1319_v32, %v1323_v33  ;;  %v1311_v41 = vld [vmem:[%s5070_s5 + $0x448] sm:$0xff] }
 0x1d9   :  { %v1146_v47 = vadd.f32 %v1145_v4, %v1105_v42  ;;  %2877 = vmatpush2.bf16.msra.mxu0 %v3324_v40  ;;  %v1152_v49 = vmax.f32 %v1144_v9, 0.0  ;;  %v3271_v40 = vcombine.high %v1192_v34, %v1196_v35  ;;  %v1315_v4 = vld [vmem:[%s5070_s5 + $0x468] sm:$0xff]  ;;  %v1188_v9 = vld [vmem:[%s5070_s5 + $0x70] sm:$0xff]  ;;  %v3396_v42 = vcombine.low %v1319_v32, %v1323_v33 }
 0x1da   :  { %v1107_v50 = vpop.f32.mrf.mxu0  ;;  %v1148_v51 = vpop.f32.mrf.mxu1  ;;  %2878 = vmatprep.subr.bf16.mxu0 %v3317_v5  ;;  %v1184_v5 = vld [vmem:[%s5070_s5 + $0x50] sm:$0xff]  ;;  %v3389_v43 = vcombine.high %v1311_v41, %v1315_v4  ;;  %v1303_v46 = vld [vmem:[%s5070_s5 + $0x408] sm:$0xff] }
 0x1db   :  { %v1153_v53 = vmax.f32 %v1146_v47, 0.0  ;;  %v4551_v59 = vpack.c.bf16 %v1152_v49, %v1152_v49  ;;  %v3263_v45 = vcombine.high %v1184_v5, %v1188_v9  ;;  %v1307_v47 = vld [vmem:[%s5070_s5 + $0x428] sm:$0xff]  ;;  %v1180_v49 = vld [vmem:[%s5070_s5 + $0x30] sm:$0xff]  ;;  %v3388_v50 = vcombine.low %v1311_v41, %v1315_v4 }
 0x1dc   :  { %v3262_v51 = vcombine.low %v1184_v5, %v1188_v9  ;;  %v1403_v24 = vld [vmem:[%s5070_s5 + $0x728] sm:$0xff]  ;;  %v1264_v35 = vld [vmem:[%s5070_s5 + $0x2d0] sm:$0xff] }
 0x1dd   :  { %v4549_v58 = vpack.c.bf16 %v1153_v53, %v1153_v53  ;;  %2879 = vmatpush2.bf16.msra.mxu0 %v3316_v48  ;;  %v1176_v48 = vld [vmem:[%s5070_s5 + $0x10] sm:$0xff]  ;;  %v1391_v33 = vld [vmem:[%s5070_s5 + $0x6c8] sm:$0xff] }
 0x1de   :  { %2930 = vmatprep.subr.bf16.mxu0 %v3311_v52  ;;  %v3381_v52 = vcombine.high %v1303_v46, %v1307_v47  ;;  %v3255_v53 = vcombine.high %v1176_v48, %v1180_v49  ;;  %v1395_v34 = vld [vmem:[%s5070_s5 + $0x6e8] sm:$0xff]  ;;  %v1256_v9 = vld [vmem:[%s5070_s5 + $0x290] sm:$0xff] }
 0x1df   :  { %2839 = vmatprep.mubr.bf16.mxu1 %v4549_v58  ;;  %v1383_v4 = vld [vmem:[%s5070_s5 + $0x688] sm:$0xff] }
 0x1e0   :  { %2840 = vmatmul.mubr.bf16.vlgmr.msra.gmra.mxu1 %v4551_v59  ;;  %2881 = vmatmul.mubr.bf16.vlgmr.msra.gmra.mxu0 %v4435_v31  ;;  %v1387_v5 = vld [vmem:[%s5070_s5 + $0x6a8] sm:$0xff] }
 0x1e1   :  { %2890 = vmatpush1.bf16.msra.mxu1 %v3436_v2  ;;  %2921 = vmatprep.mubr.bf16.mxu1 %v4549_v58  ;;  %v1212_v2 = vld [vmem:[%s5070_s5 + $0x130] sm:$0xff] }
 0x1e2   :  { %2931 = vmatpush1.bf16.msra.mxu0 %v3310_v60  ;;  %2962 = vmatprep.mubr.bf16.mxu0 %v4433_v30  ;;  %v3287_v21 = vcombine.high %v1208_v0, %v1212_v2  ;;  %v3286_v27 = vcombine.low %v1208_v0, %v1212_v2  ;;  %v3380_v60 = vcombine.low %v1303_v46, %v1307_v47  ;;  %v1411_v0 = vld [vmem:[%s5070_s5 + $0x768] sm:$0xff]  ;;  %v1280_v2 = vld [vmem:[%s5070_s5 + $0x350] sm:$0xff] }
 0x1e3   :  { %2891 = vmatprep.subr.bf16.mxu1 %v3429_v61  ;;  %2932 = vmatprep.subr.bf16.mxu0 %v3303_v62  ;;  %v3254_v61 = vcombine.low %v1176_v48, %v1180_v49  ;;  %v3501_v62 = vcombine.high %v1423_v54, %v1427_v55  ;;  %v1375_v47 = vld [vmem:[%s5070_s5 + $0x648] sm:$0xff]  ;;  %v1248_v49 = vld [vmem:[%s5070_s5 + $0x250] sm:$0xff] }
 0x1e4   :  { %v1379_v48 = vld [vmem:[%s5070_s5 + $0x668] sm:$0xff] }
 0x1e5   :  { %2892 = vmatpush1.bf16.msra.mxu1 %v3428_v7  ;;  %v1292_v7 = vld [vmem:[%s5070_s5 + $0x3b0] sm:$0xff] }
 0x1e6   :  { %2933 = vmatpush1.bf16.msra.mxu0 %v3302_v8  ;;  %2893 = vmatprep.subr.bf16.mxu1 %v3421_v10  ;;  %v3500_v8 = vcombine.low %v1423_v54, %v1427_v55  ;;  %v3374_v10 = vcombine.low %v1296_v56, %v1300_v57  ;;  %v3367_v12 = vcombine.high %v1288_v6, %v1292_v7  ;;  %v1367_v55 = vld [vmem:[%s5070_s5 + $0x608] sm:$0xff]  ;;  %v1240_v57 = vld [vmem:[%s5070_s5 + $0x210] sm:$0xff] }
 0x1e7   :  { %2934 = vmatprep.subr.bf16.mxu0 %v3295_v11  ;;  %v3493_v11 = vcombine.high %v1415_v44, %v1419_v1  ;;  %v1371_v56 = vld [vmem:[%s5070_s5 + $0x628] sm:$0xff] }
 0x1e9   :  { %2894 = vmatpush1.bf16.msra.mxu1 %v3420_v16  ;;  %v1284_v16 = vld [vmem:[%s5070_s5 + $0x370] sm:$0xff] }
 0x1ea   :  { %2935 = vmatpush1.bf16.msra.mxu0 %v3294_v19  ;;  %2895 = vmatprep.subr.bf16.mxu1 %v3413_v20  ;;  %v3492_v19 = vcombine.low %v1415_v44, %v1419_v1  ;;  %v3366_v20 = vcombine.low %v1288_v6, %v1292_v7  ;;  %v3359_v22 = vcombine.high %v1280_v2, %v1284_v16  ;;  %v1360_v1 = vld [vmem:[%s5070_s5 + $0x5d0] sm:$0xff]  ;;  %v1233_v7 = vld [vmem:[%s5070_s5 + $0x1d8] sm:$0xff] }
 0x1eb   :  { %2936 = vmatprep.subr.bf16.mxu0 %v3287_v21  ;;  %v3485_v21 = vcombine.high %v1407_v63, %v1411_v0  ;;  %v1364_v6 = vld [vmem:[%s5070_s5 + $0x5f0] sm:$0xff] }
 0x1ed   :  { %2896 = vmatpush1.bf16.msra.mxu1 %v3412_v26  ;;  %v1276_v26 = vld [vmem:[%s5070_s5 + $0x330] sm:$0xff] }
 0x1ee   :  { %2937 = vmatpush1.bf16.msra.mxu0 %v3286_v27  ;;  %2897 = vmatprep.subr.bf16.mxu1 %v3405_v28  ;;  %v3484_v27 = vcombine.low %v1407_v63, %v1411_v0  ;;  %v3358_v28 = vcombine.low %v1280_v2, %v1284_v16  ;;  %v3351_v32 = vcombine.high %v1272_v25, %v1276_v26  ;;  %v1352_v0 = vld [vmem:[%s5070_s5 + $0x590] sm:$0xff] }
 0x1ef   :  { %2938 = vmatprep.subr.bf16.mxu0 %v3279_v29  ;;  %v3477_v29 = vcombine.high %v1399_v23, %v1403_v24  ;;  %v1356_v2 = vld [vmem:[%s5070_s5 + $0x5b0] sm:$0xff]  ;;  %v3438_v16 = vcombine.low %v1360_v1, %v1364_v6 }
 0x1f1   :  { %2898 = vmatpush1.bf16.msra.mxu1 %v3404_v36  ;;  %v1268_v36 = vld [vmem:[%s5070_s5 + $0x2f0] sm:$0xff] }
 0x1f2   :  { %2939 = vmatpush1.bf16.msra.mxu0 %v3278_v38  ;;  %2899 = vmatprep.subr.bf16.mxu1 %v3397_v39  ;;  %v3476_v38 = vcombine.low %v1399_v23, %v1403_v24  ;;  %v3350_v39 = vcombine.low %v1272_v25, %v1276_v26  ;;  %v3343_v41 = vcombine.high %v1264_v35, %v1268_v36  ;;  %v1344_v23 = vld [vmem:[%s5070_s5 + $0x550] sm:$0xff]  ;;  %v1217_v26 = vld [vmem:[%s5070_s5 + $0x158] sm:$0xff] }
 0x1f3   :  { %2940 = vmatprep.subr.bf16.mxu0 %v3271_v40  ;;  %v3469_v40 = vcombine.high %v1391_v33, %v1395_v34  ;;  %v1348_v24 = vld [vmem:[%s5070_s5 + $0x570] sm:$0xff] }
 0x1f5   :  { %2900 = vmatpush1.bf16.msra.mxu1 %v3396_v42  ;;  %v1260_v42 = vld [vmem:[%s5070_s5 + $0x2b0] sm:$0xff] }
 0x1f6   :  { %2941 = vmatpush1.bf16.msra.mxu0 %v3270_v3  ;;  %2901 = vmatprep.subr.bf16.mxu1 %v3389_v43  ;;  %v3468_v3 = vcombine.low %v1391_v33, %v1395_v34  ;;  %v3342_v43 = vcombine.low %v1264_v35, %v1268_v36  ;;  %v3335_v46 = vcombine.high %v1256_v9, %v1260_v42  ;;  %v1336_v34 = vld [vmem:[%s5070_s5 + $0x510] sm:$0xff]  ;;  %v1209_v36 = vld [vmem:[%s5070_s5 + $0x118] sm:$0xff] }
 0x1f7   :  { %2942 = vmatprep.subr.bf16.mxu0 %v3263_v45  ;;  %v3461_v45 = vcombine.high %v1383_v4, %v1387_v5  ;;  %v1340_v35 = vld [vmem:[%s5070_s5 + $0x530] sm:$0xff] }
 0x1f9   :  { %2902 = vmatpush1.bf16.msra.mxu1 %v3388_v50  ;;  %v1252_v50 = vld [vmem:[%s5070_s5 + $0x270] sm:$0xff] }
 0x1fa   :  { %2943 = vmatpush1.bf16.msra.mxu0 %v3262_v51  ;;  %2903 = vmatprep.subr.bf16.mxu1 %v3381_v52  ;;  %v3460_v51 = vcombine.low %v1383_v4, %v1387_v5  ;;  %v3334_v52 = vcombine.low %v1256_v9, %v1260_v42  ;;  %v3327_v54 = vcombine.high %v1248_v49, %v1252_v50  ;;  %v1328_v4 = vld [vmem:[%s5070_s5 + $0x4d0] sm:$0xff]  ;;  %v1201_v9 = vld [vmem:[%s5070_s5 + $0xd8] sm:$0xff] }
 0x1fb   :  { %2944 = vmatprep.subr.bf16.mxu0 %v3255_v53  ;;  %v3453_v53 = vcombine.high %v1375_v47, %v1379_v48  ;;  %v1332_v5 = vld [vmem:[%s5070_s5 + $0x4f0] sm:$0xff]  ;;  %v1205_v42 = vld [vmem:[%s5070_s5 + $0xf8] sm:$0xff] }
 0x1fd   :  { %2904 = vmatpush1.bf16.msra.mxu1 %v3380_v60  ;;  %v1244_v60 = vld [vmem:[%s5070_s5 + $0x230] sm:$0xff] }
 0x1fe   :  { %2945 = vmatpush1.bf16.msra.mxu0 %v3254_v61  ;;  %2905 = vmatprep.subr.bf16.mxu1 %v3501_v62  ;;  %v3452_v61 = vcombine.low %v1375_v47, %v1379_v48  ;;  %v3326_v62 = vcombine.low %v1248_v49, %v1252_v50  ;;  %v3319_v44 = vcombine.high %v1240_v57, %v1244_v60  ;;  %v1320_v47 = vld [vmem:[%s5070_s5 + $0x490] sm:$0xff]  ;;  %v1193_v49 = vld [vmem:[%s5070_s5 + $0x98] sm:$0xff] }
 0x1ff   :  { %2946 = vmatprep.subr.bf16.mxu0 %v3375_v37  ;;  %v3445_v37 = vcombine.high %v1367_v55, %v1371_v56  ;;  %v1324_v48 = vld [vmem:[%s5070_s5 + $0x4b0] sm:$0xff]  ;;  %v1197_v50 = vld [vmem:[%s5070_s5 + $0xb8] sm:$0xff] }
 0x201   :  { %2906 = vmatpush2.bf16.msra.mxu1 %v3500_v8  ;;  %v1237_v8 = vld [vmem:[%s5070_s5 + $0x1f8] sm:$0xff] }
 0x202   :  { %2947 = vmatpush2.bf16.msra.mxu0 %v3374_v10  ;;  %2907 = vmatprep.subr.bf16.mxu1 %v3493_v11  ;;  %v3444_v10 = vcombine.low %v1367_v55, %v1371_v56  ;;  %v3318_v11 = vcombine.low %v1240_v57, %v1244_v60  ;;  %v3313_v63 = vcombine.high %v1233_v7, %v1237_v8  ;;  %v1312_v55 = vld [vmem:[%s5070_s5 + $0x450] sm:$0xff]  ;;  %v1185_v57 = vld [vmem:[%s5070_s5 + $0x58] sm:$0xff] }
 0x203   :  { %2948 = vmatprep.subr.bf16.mxu0 %v3367_v12  ;;  %v3439_v12 = vcombine.high %v1360_v1, %v1364_v6  ;;  %v1316_v56 = vld [vmem:[%s5070_s5 + $0x470] sm:$0xff]  ;;  %v1189_v60 = vld [vmem:[%s5070_s5 + $0x78] sm:$0xff] }
 0x204   :  { %v1304_v1 = vld [vmem:[%s5070_s5 + $0x410] sm:$0xff] }
 0x205   :  { %2908 = vmatpush2.bf16.msra.mxu1 %v3492_v19  ;;  %v1225_v19 = vld [vmem:[%s5070_s5 + $0x198] sm:$0xff]  ;;  %v1308_v6 = vld [vmem:[%s5070_s5 + $0x430] sm:$0xff] }
 0x206   :  { %2949 = vmatpush2.bf16.msra.mxu0 %v3366_v20  ;;  %2909 = vmatprep.subr.bf16.mxu1 %v3485_v21  ;;  %v1229_v20 = vld [vmem:[%s5070_s5 + $0x1b8] sm:$0xff]  ;;  %v3312_v21 = vcombine.low %v1233_v7, %v1237_v8 }
 0x207   :  { %2950 = vmatprep.subr.bf16.mxu0 %v3359_v22  ;;  %v3431_v22 = vcombine.high %v1352_v0, %v1356_v2  ;;  %v3305_v25 = vcombine.high %v1225_v19, %v1229_v20  ;;  %v1177_v7 = vld [vmem:[%s5070_s5 + $0x18] sm:$0xff] }
 0x208   :  { %v1181_v8 = vld [vmem:[%s5070_s5 + $0x38] sm:$0xff] }
 0x209   :  { %2910 = vmatpush2.bf16.msra.mxu1 %v3484_v27  ;;  %v1221_v27 = vld [vmem:[%s5070_s5 + $0x178] sm:$0xff] }
 0x20a   :  { %2951 = vmatpush2.bf16.msra.mxu0 %v3358_v28  ;;  %2911 = vmatprep.subr.bf16.mxu1 %v3477_v29  ;;  %v3430_v28 = vcombine.low %v1352_v0, %v1356_v2  ;;  %v3304_v29 = vcombine.low %v1225_v19, %v1229_v20  ;;  %v3297_v33 = vcombine.high %v1217_v26, %v1221_v27  ;;  %v1424_v0 = vld [vmem:[%s5070_s5 + $0x7d0] sm:$0xff]  ;;  %v1301_v19 = vld [vmem:[%s5070_s5 + $0x3f8] sm:$0xff] }
 0x20b   :  { %2952 = vmatprep.subr.bf16.mxu0 %v3351_v32  ;;  %v3423_v32 = vcombine.high %v1344_v23, %v1348_v24  ;;  %v1428_v2 = vld [vmem:[%s5070_s5 + $0x7f0] sm:$0xff]  ;;  %v3382_v20 = vcombine.low %v1304_v1, %v1308_v6 }
 0x20d   :  { %2912 = vmatpush2.bf16.msra.mxu1 %v3476_v38  ;;  %v1213_v38 = vld [vmem:[%s5070_s5 + $0x138] sm:$0xff] }
 0x20e   :  { %2953 = vmatpush2.bf16.msra.mxu0 %v3350_v39  ;;  %2913 = vmatprep.subr.bf16.mxu1 %v3469_v40  ;;  %v3296_v39 = vcombine.low %v1217_v26, %v1221_v27  ;;  %v3415_v40 = vcombine.high %v1336_v34, %v1340_v35  ;;  %v1289_v26 = vld [vmem:[%s5070_s5 + $0x398] sm:$0xff] }
 0x20f   :  { %2954 = vmatprep.subr.bf16.mxu0 %v3343_v41  ;;  %v3289_v41 = vcombine.high %v1209_v36, %v1213_v38  ;;  %v1293_v27 = vld [vmem:[%s5070_s5 + $0x3b8] sm:$0xff] }
 0x211   :  { %2914 = vmatpush2.bf16.msra.mxu1 %v3468_v3  ;;  %v3414_v3 = vcombine.low %v1336_v34, %v1340_v35  ;;  %v1408_v34 = vld [vmem:[%s5070_s5 + $0x750] sm:$0xff] }
 0x212   :  { %2955 = vmatpush2.bf16.msra.mxu0 %v3342_v43  ;;  %2915 = vmatprep.subr.bf16.mxu1 %v3461_v45  ;;  %v3288_v43 = vcombine.low %v1209_v36, %v1213_v38  ;;  %v3407_v45 = vcombine.high %v1328_v4, %v1332_v5  ;;  %v1412_v35 = vld [vmem:[%s5070_s5 + $0x770] sm:$0xff]  ;;  %v1281_v36 = vld [vmem:[%s5070_s5 + $0x358] sm:$0xff] }
 0x213   :  { %2956 = vmatprep.subr.bf16.mxu0 %v3335_v46  ;;  %v3281_v46 = vcombine.high %v1201_v9, %v1205_v42  ;;  %v1285_v38 = vld [vmem:[%s5070_s5 + $0x378] sm:$0xff] }
 0x215   :  { %2916 = vmatpush2.bf16.msra.mxu1 %v3460_v51  ;;  %v3406_v51 = vcombine.low %v1328_v4, %v1332_v5  ;;  %v1400_v4 = vld [vmem:[%s5070_s5 + $0x710] sm:$0xff] }
 0x216   :  { %2957 = vmatpush2.bf16.msra.mxu0 %v3334_v52  ;;  %2917 = vmatprep.subr.bf16.mxu1 %v3453_v53  ;;  %v3280_v52 = vcombine.low %v1201_v9, %v1205_v42  ;;  %v3399_v53 = vcombine.high %v1320_v47, %v1324_v48  ;;  %v1404_v5 = vld [vmem:[%s5070_s5 + $0x730] sm:$0xff]  ;;  %v1273_v9 = vld [vmem:[%s5070_s5 + $0x318] sm:$0xff] }
 0x217   :  { %2958 = vmatprep.subr.bf16.mxu0 %v3327_v54  ;;  %v3273_v54 = vcombine.high %v1193_v49, %v1197_v50  ;;  %v1277_v42 = vld [vmem:[%s5070_s5 + $0x338] sm:$0xff] }
 0x219   :  { %2918 = vmatpush2.bf16.msra.mxu1 %v3452_v61  ;;  %v3398_v61 = vcombine.low %v1320_v47, %v1324_v48  ;;  %v1392_v47 = vld [vmem:[%s5070_s5 + $0x6d0] sm:$0xff] }
 0x21a   :  { %2959 = vmatpush2.bf16.msra.mxu0 %v3326_v62  ;;  %2919 = vmatprep.subr.bf16.mxu1 %v3445_v37  ;;  %v3272_v62 = vcombine.low %v1193_v49, %v1197_v50  ;;  %v3391_v37 = vcombine.high %v1312_v55, %v1316_v56  ;;  %v1396_v48 = vld [vmem:[%s5070_s5 + $0x6f0] sm:$0xff]  ;;  %v1265_v49 = vld [vmem:[%s5070_s5 + $0x2d8] sm:$0xff] }
 0x21b   :  { %2960 = vmatprep.subr.bf16.mxu0 %v3319_v44  ;;  %v3265_v44 = vcombine.high %v1185_v57, %v1189_v60  ;;  %v1269_v50 = vld [vmem:[%s5070_s5 + $0x2f8] sm:$0xff] }
 0x21d   :  { %2920 = vmatpush2.bf16.msra.mxu1 %v3444_v10  ;;  %v3390_v10 = vcombine.low %v1312_v55, %v1316_v56  ;;  %v1384_v55 = vld [vmem:[%s5070_s5 + $0x690] sm:$0xff] }
 0x21e   :  { %2961 = vmatpush2.bf16.msra.mxu0 %v3318_v11  ;;  %2971 = vmatprep.subr.bf16.mxu1 %v3439_v12  ;;  %v3264_v11 = vcombine.low %v1185_v57, %v1189_v60  ;;  %v3383_v12 = vcombine.high %v1304_v1, %v1308_v6  ;;  %v1388_v56 = vld [vmem:[%s5070_s5 + $0x6b0] sm:$0xff]  ;;  %v1257_v57 = vld [vmem:[%s5070_s5 + $0x298] sm:$0xff] }
 0x21f   :  { %3012 = vmatprep.subr.bf16.mxu0 %v3313_v63  ;;  %v3257_v63 = vcombine.high %v1177_v7, %v1181_v8  ;;  %v1261_v60 = vld [vmem:[%s5070_s5 + $0x2b8] sm:$0xff]  ;;  %v1376_v1 = vld [vmem:[%s5070_s5 + $0x650] sm:$0xff] }
 0x220   :  { %2922 = vmatmul.mubr.bf16.vlgmr.msra.gmra.mxu1 %v4551_v59  ;;  %v1380_v6 = vld [vmem:[%s5070_s5 + $0x670] sm:$0xff] }
 0x221   :  { %2963 = vmatmul.mubr.bf16.vlgmr.msra.gmra.mxu0 %v4435_v31  ;;  %2972 = vmatpush1.bf16.msra.mxu1 %v3438_v16  ;;  %v1297_v16 = vld [vmem:[%s5070_s5 + $0x3d8] sm:$0xff] }
 0x222   :  { %3003 = vmatprep.mubr.bf16.mxu1 %v4549_v58  ;;  %3013 = vmatpush1.bf16.msra.mxu0 %v3312_v21  ;;  %v3256_v21 = vcombine.low %v1177_v7, %v1181_v8  ;;  %v1249_v7 = vld [vmem:[%s5070_s5 + $0x258] sm:$0xff] }
 0x223   :  { %3044 = vmatprep.mubr.bf16.mxu0 %v4433_v30  ;;  %2973 = vmatprep.subr.bf16.mxu1 %v3431_v22  ;;  %v3422_v30 = vcombine.low %v1344_v23, %v1348_v24  ;;  %v3503_v22 = vcombine.high %v1424_v0, %v1428_v2  ;;  %v3377_v23 = vcombine.high %v1297_v16, %v1301_v19  ;;  %v1416_v24 = vld [vmem:[%s5070_s5 + $0x790] sm:$0xff]  ;;  %v1253_v8 = vld [vmem:[%s5070_s5 + $0x278] sm:$0xff] }
 0x224   :  { %3014 = vmatprep.subr.bf16.mxu0 %v3305_v25  ;;  %v1420_v25 = vld [vmem:[%s5070_s5 + $0x7b0] sm:$0xff] }
 0x225   :  { %2974 = vmatpush1.bf16.msra.mxu1 %v3430_v28  ;;  %v3502_v28 = vcombine.low %v1424_v0, %v1428_v2  ;;  %v1368_v0 = vld [vmem:[%s5070_s5 + $0x610] sm:$0xff] }
 0x226   :  { %3015 = vmatpush1.bf16.msra.mxu0 %v3304_v29  ;;  %2975 = vmatprep.subr.bf16.mxu1 %v3423_v32  ;;  %v3376_v29 = vcombine.low %v1297_v16, %v1301_v19  ;;  %v3495_v32 = vcombine.high %v1416_v24, %v1420_v25  ;;  %v1372_v2 = vld [vmem:[%s5070_s5 + $0x630] sm:$0xff]  ;;  %v1241_v16 = vld [vmem:[%s5070_s5 + $0x218] sm:$0xff] }
 0x227   :  { %3016 = vmatprep.subr.bf16.mxu0 %v3297_v33  ;;  %v3369_v33 = vcombine.high %v1289_v26, %v1293_v27  ;;  %v1245_v19 = vld [vmem:[%s5070_s5 + $0x238] sm:$0xff] }
 0x229   :  { %2976 = vmatpush1.bf16.msra.mxu1 %v3422_v30  ;;  %v3494_v30 = vcombine.low %v1416_v24, %v1420_v25  ;;  %v1361_v24 = vld [vmem:[%s5070_s5 + $0x5d8] sm:$0xff] }
 0x22a   :  { %3017 = vmatpush1.bf16.msra.mxu0 %v3296_v39  ;;  %2977 = vmatprep.subr.bf16.mxu1 %v3415_v40  ;;  %v3368_v39 = vcombine.low %v1289_v26, %v1293_v27  ;;  %v3487_v40 = vcombine.high %v1408_v34, %v1412_v35  ;;  %v1365_v25 = vld [vmem:[%s5070_s5 + $0x5f8] sm:$0xff]  ;;  %v3446_v26 = vcombine.low %v1368_v0, %v1372_v2 }
 0x22b   :  { %3018 = vmatprep.subr.bf16.mxu0 %v3289_v41  ;;  %v3361_v41 = vcombine.high %v1281_v36, %v1285_v38  ;;  %v3320_v27 = vcombine.low %v1241_v16, %v1245_v19 }
 0x22d   :  { %2978 = vmatpush1.bf16.msra.mxu1 %v3414_v3  ;;  %v3486_v3 = vcombine.low %v1408_v34, %v1412_v35  ;;  %v1345_v35 = vld [vmem:[%s5070_s5 + $0x558] sm:$0xff] }
 0x22e   :  { %3019 = vmatpush1.bf16.msra.mxu0 %v3288_v43  ;;  %2979 = vmatprep.subr.bf16.mxu1 %v3407_v45  ;;  %v3360_v43 = vcombine.low %v1281_v36, %v1285_v38  ;;  %v3479_v45 = vcombine.high %v1400_v4, %v1404_v5  ;;  %v1349_v36 = vld [vmem:[%s5070_s5 + $0x578] sm:$0xff] }
 0x22f   :  { %3020 = vmatprep.subr.bf16.mxu0 %v3281_v46  ;;  %v3353_v46 = vcombine.high %v1273_v9, %v1277_v42 }
 0x231   :  { %2980 = vmatpush1.bf16.msra.mxu1 %v3406_v51  ;;  %v3478_v51 = vcombine.low %v1400_v4, %v1404_v5  ;;  %v1341_v4 = vld [vmem:[%s5070_s5 + $0x538] sm:$0xff] }
 0x232   :  { %3021 = vmatpush1.bf16.msra.mxu0 %v3280_v52  ;;  %2981 = vmatprep.subr.bf16.mxu1 %v3399_v53  ;;  %v3352_v52 = vcombine.low %v1273_v9, %v1277_v42  ;;  %v3471_v53 = vcombine.high %v1392_v47, %v1396_v48  ;;  %v3424_v9 = vcombine.low %v1345_v35, %v1349_v36 }
 0x233   :  { %3022 = vmatprep.subr.bf16.mxu0 %v3273_v54  ;;  %v3345_v54 = vcombine.high %v1265_v49, %v1269_v50 }
 0x235   :  { %2982 = vmatpush1.bf16.msra.mxu1 %v3398_v61  ;;  %v3470_v61 = vcombine.low %v1392_v47, %v1396_v48  ;;  %v1325_v47 = vld [vmem:[%s5070_s5 + $0x4b8] sm:$0xff] }
 0x236   :  { %3023 = vmatpush1.bf16.msra.mxu0 %v3272_v62  ;;  %2983 = vmatprep.subr.bf16.mxu1 %v3391_v37  ;;  %v3344_v62 = vcombine.low %v1265_v49, %v1269_v50  ;;  %v3463_v37 = vcombine.high %v1384_v55, %v1388_v56  ;;  %v1313_v50 = vld [vmem:[%s5070_s5 + $0x458] sm:$0xff] }
 0x237   :  { %3024 = vmatprep.subr.bf16.mxu0 %v3265_v44  ;;  %v3337_v44 = vcombine.high %v1257_v57, %v1261_v60 }
 0x239   :  { %2984 = vmatpush1.bf16.msra.mxu1 %v3390_v10  ;;  %v3462_v10 = vcombine.low %v1384_v55, %v1388_v56  ;;  %v1309_v55 = vld [vmem:[%s5070_s5 + $0x438] sm:$0xff] }
 0x23a   :  { %3025 = vmatpush1.bf16.msra.mxu0 %v3264_v11  ;;  %2985 = vmatprep.subr.bf16.mxu1 %v3383_v12  ;;  %v3336_v11 = vcombine.low %v1257_v57, %v1261_v60  ;;  %v3455_v12 = vcombine.high %v1376_v1, %v1380_v6  ;;  %v1425_v60 = vld [vmem:[%s5070_s5 + $0x7d8] sm:$0xff] }
 0x23b   :  { %3026 = vmatprep.subr.bf16.mxu0 %v3257_v63  ;;  %v3329_v63 = vcombine.high %v1249_v7, %v1253_v8 }
 0x23d   :  { %2986 = vmatpush1.bf16.msra.mxu1 %v3382_v20  ;;  %v3454_v20 = vcombine.low %v1376_v1, %v1380_v6  ;;  %v1421_v1 = vld [vmem:[%s5070_s5 + $0x7b8] sm:$0xff] }
 0x23e   :  { %3027 = vmatpush1.bf16.msra.mxu0 %v3256_v21  ;;  %2987 = vmatprep.subr.bf16.mxu1 %v3503_v22  ;;  %v3328_v21 = vcombine.low %v1249_v7, %v1253_v8  ;;  %v3447_v22 = vcombine.high %v1368_v0, %v1372_v2  ;;  %v1409_v8 = vld [vmem:[%s5070_s5 + $0x758] sm:$0xff] }
 0x23f   :  { %3028 = vmatprep.subr.bf16.mxu0 %v3377_v23  ;;  %v3321_v23 = vcombine.high %v1241_v16, %v1245_v19  ;;  %v1405_v0 = vld [vmem:[%s5070_s5 + $0x738] sm:$0xff] }
 0x240   :  { %v1393_v19 = vld [vmem:[%s5070_s5 + $0x6d8] sm:$0xff] }
 0x241   :  { %2988 = vmatpush2.bf16.msra.mxu1 %v3502_v28  ;;  %v3441_v28 = vcombine.high %v1361_v24, %v1365_v25 }
 0x242   :  { %3029 = vmatpush2.bf16.msra.mxu0 %v3376_v29  ;;  %2989 = vmatprep.subr.bf16.mxu1 %v3495_v32  ;;  %v1353_v29 = vld [vmem:[%s5070_s5 + $0x598] sm:$0xff] }
 0x243   :  { %3030 = vmatprep.subr.bf16.mxu0 %v3369_v33  ;;  %v1357_v32 = vld [vmem:[%s5070_s5 + $0x5b8] sm:$0xff]  ;;  %v3440_v33 = vcombine.low %v1361_v24, %v1365_v25 }
 0x244   :  { %v3433_v34 = vcombine.high %v1353_v29, %v1357_v32  ;;  %v1389_v24 = vld [vmem:[%s5070_s5 + $0x6b8] sm:$0xff] }
 0x245   :  { %2990 = vmatpush2.bf16.msra.mxu1 %v3494_v30  ;;  %v3432_v30 = vcombine.low %v1353_v29, %v1357_v32 }
 0x246   :  { %3031 = vmatpush2.bf16.msra.mxu0 %v3368_v39  ;;  %2991 = vmatprep.subr.bf16.mxu1 %v3487_v40  ;;  %v3425_v40 = vcombine.high %v1345_v35, %v1349_v36 }
 0x247   :  { %3032 = vmatprep.subr.bf16.mxu0 %v3361_v41  ;;  %v1337_v41 = vld [vmem:[%s5070_s5 + $0x518] sm:$0xff] }
 0x248   :  { %v3417_v42 = vcombine.high %v1337_v41, %v1341_v4 }
 0x249   :  { %2992 = vmatpush2.bf16.msra.mxu1 %v3486_v3  ;;  %v1333_v3 = vld [vmem:[%s5070_s5 + $0x4f8] sm:$0xff] }
 0x24a   :  { %3033 = vmatpush2.bf16.msra.mxu0 %v3360_v43  ;;  %2993 = vmatprep.subr.bf16.mxu1 %v3479_v45  ;;  %v3416_v43 = vcombine.low %v1337_v41, %v1341_v4 }
 0x24b   :  { %3034 = vmatprep.subr.bf16.mxu0 %v3353_v46  ;;  %v1321_v46 = vld [vmem:[%s5070_s5 + $0x498] sm:$0xff] }
 0x24c   :  { %v3401_v49 = vcombine.high %v1321_v46, %v1325_v47 }
 0x24d   :  { %2994 = vmatpush2.bf16.msra.mxu1 %v3478_v51  ;;  %v1317_v51 = vld [vmem:[%s5070_s5 + $0x478] sm:$0xff] }
 0x24e   :  { %3035 = vmatpush2.bf16.msra.mxu0 %v3352_v52  ;;  %2995 = vmatprep.subr.bf16.mxu1 %v3471_v53  ;;  %v3400_v52 = vcombine.low %v1321_v46, %v1325_v47  ;;  %v3393_v53 = vcombine.high %v1313_v50, %v1317_v51  ;;  %v3392_v56 = vcombine.low %v1313_v50, %v1317_v51 }
 0x24f   :  { %3036 = vmatprep.subr.bf16.mxu0 %v3345_v54  ;;  %v1305_v54 = vld [vmem:[%s5070_s5 + $0x418] sm:$0xff] }
 0x250   :  { %v3385_v57 = vcombine.high %v1305_v54, %v1309_v55 }
 0x251   :  { %2996 = vmatpush2.bf16.msra.mxu1 %v3470_v61  ;;  %v1429_v61 = vld [vmem:[%s5070_s5 + $0x7f8] sm:$0xff] }
 0x252   :  { %3037 = vmatpush2.bf16.msra.mxu0 %v3344_v62  ;;  %2997 = vmatprep.subr.bf16.mxu1 %v3463_v37  ;;  %v3384_v62 = vcombine.low %v1305_v54, %v1309_v55  ;;  %v3505_v37 = vcombine.high %v1425_v60, %v1429_v61  ;;  %v3504_v6 = vcombine.low %v1425_v60, %v1429_v61  ;;  %v1454_v60 = vsub.s32 5, %v3983_v13 }
 0x253   :  { %3038 = vmatprep.subr.bf16.mxu0 %v3337_v44  ;;  %v1417_v44 = vld [vmem:[%s5070_s5 + $0x798] sm:$0xff] }
 0x254   :  { %v3497_v7 = vcombine.high %v1417_v44, %v1421_v1 }
 0x255   :  { %2998 = vmatpush2.bf16.msra.mxu1 %v3462_v10  ;;  %v1413_v10 = vld [vmem:[%s5070_s5 + $0x778] sm:$0xff] }
 0x256   :  { %3039 = vmatpush2.bf16.msra.mxu0 %v3336_v11  ;;  %2999 = vmatprep.subr.bf16.mxu1 %v3455_v12  ;;  %v3496_v11 = vcombine.low %v1417_v44, %v1421_v1  ;;  %v3489_v12 = vcombine.high %v1409_v8, %v1413_v10  ;;  %v3488_v2 = vcombine.low %v1409_v8, %v1413_v10 }
 0x257   :  { %3040 = vmatprep.subr.bf16.mxu0 %v3329_v63  ;;  %v1401_v63 = vld [vmem:[%s5070_s5 + $0x718] sm:$0xff] }
 0x258   :  { %v3481_v16 = vcombine.high %v1401_v63, %v1405_v0 }
 0x259   :  { %3000 = vmatpush2.bf16.msra.mxu1 %v3454_v20  ;;  %v1397_v20 = vld [vmem:[%s5070_s5 + $0x6f8] sm:$0xff] }
 0x25a   :  { %3041 = vmatpush2.bf16.msra.mxu0 %v3328_v21  ;;  %3001 = vmatprep.subr.bf16.mxu1 %v3447_v22  ;;  %v3480_v21 = vcombine.low %v1401_v63, %v1405_v0  ;;  %v3473_v22 = vcombine.high %v1393_v19, %v1397_v20  ;;  %v3472_v25 = vcombine.low %v1393_v19, %v1397_v20  ;;  %v1462_v19 = vsub.s32 7, %v3983_v13 }
 0x25b   :  { %3042 = vmatprep.subr.bf16.mxu0 %v3321_v23  ;;  %v1385_v23 = vld [vmem:[%s5070_s5 + $0x698] sm:$0xff] }
 0x25c   :  { %v3464_v29 = vcombine.low %v1385_v23, %v1389_v24 }
 0x25d   :  { %3002 = vmatpush2.bf16.msra.mxu1 %v3446_v26  ;;  %v3465_v26 = vcombine.high %v1385_v23, %v1389_v24 }
 0x25e   :  { %3043 = vmatpush2.bf16.msra.mxu0 %v3320_v27  ;;  %3053 = vmatprep.subr.bf16.mxu1 %v3441_v28  ;;  %v1377_v27 = vld [vmem:[%s5070_s5 + $0x658] sm:$0xff] }
 0x25f   :  { %v1381_v28 = vld [vmem:[%s5070_s5 + $0x678] sm:$0xff] }
 0x260   :  { %3004 = vmatmul.mubr.bf16.vlgmr.msra.gmra.mxu1 %v4551_v59  ;;  %v4944_v38 = vpop.f32.mrf.mxu0  ;;  %v3457_v32 = vcombine.high %v1377_v27, %v1381_v28  ;;  %v3456_v35 = vcombine.low %v1377_v27, %v1381_v28 }
 0x261   :  { %3045 = vmatmul.mubr.bf16.vlgmr.msra.gmra.mxu0 %v4435_v31  ;;  %3054 = vmatpush1.bf16.msra.mxu1 %v3440_v33  ;;  %v1369_v33 = vld [vmem:[%s5070_s5 + $0x618] sm:$0xff] }
 0x262   :  { %3085 = vmatprep.mubr.bf16.mxu1 %v4549_v58  ;;  %v4948_v39 = vpop.f32.mrf.mxu0  ;;  %3055 = vmatprep.subr.bf16.mxu1 %v3433_v34  ;;  %v1329_v58 = vld [vmem:[%s5070_s5 + $0x4d8] sm:$0xff] }
 0x263   :  { %v3409_v45 = vcombine.high %v1329_v58, %v1333_v3  ;;  %v3408_v48 = vcombine.low %v1329_v58, %v1333_v3  ;;  %v1373_v34 = vld [vmem:[%s5070_s5 + $0x638] sm:$0xff] }
 0x264   :  { %v2804_v5 = vpop.f32.mrf.mxu0  ;;  %v3449_v36 = vcombine.high %v1369_v33, %v1373_v34 }
 0x265   :  { %3056 = vmatpush1.bf16.msra.mxu1 %v3432_v30  ;;  %v1430_v30 = vld [vmem:[%s5072_s6] sm:$0xff] }
 0x266   :  { %v2805_v31 = vpop.f32.mrf.mxu0  ;;  %3057 = vmatprep.subr.bf16.mxu1 %v3425_v40  ;;  %v3448_v40 = vcombine.low %v1369_v33, %v1373_v34  ;;  %v1435_v41 = vrot.slane %v1430_v30, %v3986_v14  ;;  %v1439_v4 = vrot.slane %v1430_v30, %v3995_v17 }
 0x268   :  { %v2801_v5 = vadd.f32 %v4944_v38, %v1435_v41  ;;  %v1443_v38 = vrot.slane %v1430_v30, %v3989_v15 }
 0x269   :  { %3058 = vmatpush1.bf16.msra.mxu1 %v3424_v9 }
 0x26a   :  { %3059 = vmatprep.subr.bf16.mxu1 %v3417_v42  ;;  %v2803_v42 = vadd.f32 %v4948_v39, %v1439_v4  ;;  %v1447_v39 = vrot.slane %v1430_v30, %v3998_v18 }
 0x26d   :  { %3060 = vmatpush1.bf16.msra.mxu1 %v3416_v43 }
 0x26e   :  { %3061 = vmatprep.subr.bf16.mxu1 %v3409_v45 }
 0x271   :  { %3062 = vmatpush1.bf16.msra.mxu1 %v3408_v48 }
 0x272   :  { %3063 = vmatprep.subr.bf16.mxu1 %v3401_v49 }
 0x275   :  { %3064 = vmatpush1.bf16.msra.mxu1 %v3400_v52 }
 0x276   :  { %3065 = vmatprep.subr.bf16.mxu1 %v3393_v53 }
 0x279   :  { %3066 = vmatpush1.bf16.msra.mxu1 %v3392_v56 }
 0x27a   :  { %3067 = vmatprep.subr.bf16.mxu1 %v3385_v57  ;;  %v1450_v57 = vsub.s32 4, %v3983_v13 }
 0x27c   :  { %v1451_v61 = vrot.slane %v1430_v30, %v1450_v57 }
 0x27d   :  { %3068 = vmatpush1.bf16.msra.mxu1 %v3384_v62  ;;  %v1455_v62 = vrot.slane %v1430_v30, %v1454_v60 }
 0x27e   :  { %3069 = vmatprep.subr.bf16.mxu1 %v3505_v37 }
 0x281   :  { %3070 = vmatpush2.bf16.msra.mxu1 %v3504_v6 }
 0x282   :  { %3071 = vmatprep.subr.bf16.mxu1 %v3497_v7 }
 0x285   :  { %3072 = vmatpush2.bf16.msra.mxu1 %v3496_v11 }
 0x286   :  { %3073 = vmatprep.subr.bf16.mxu1 %v3489_v12 }
 0x289   :  { %3074 = vmatpush2.bf16.msra.mxu1 %v3488_v2 }
 0x28a   :  { %3075 = vmatprep.subr.bf16.mxu1 %v3481_v16  ;;  %v1458_v16 = vsub.s32 6, %v3983_v13 }
 0x28c   :  { %v1459_v20 = vrot.slane %v1430_v30, %v1458_v16 }
 0x28d   :  { %3076 = vmatpush2.bf16.msra.mxu1 %v3480_v21  ;;  %v1463_v21 = vrot.slane %v1430_v30, %v1462_v19 }
 0x28e   :  { %3077 = vmatprep.subr.bf16.mxu1 %v3473_v22 }
 0x291   :  { %3078 = vmatpush2.bf16.msra.mxu1 %v3472_v25 }
 0x292   :  { %3079 = vmatprep.subr.bf16.mxu1 %v3465_v26 }
 0x295   :  { %3080 = vmatpush2.bf16.msra.mxu1 %v3464_v29 }
 0x296   :  { %3081 = vmatprep.subr.bf16.mxu1 %v3457_v32 }
 0x299   :  { %3082 = vmatpush2.bf16.msra.mxu1 %v3456_v35 }
 0x29a   :  { %3083 = vmatprep.subr.bf16.mxu1 %v3449_v36 }
 0x29d   :  { %3084 = vmatpush2.bf16.msra.mxu1 %v3448_v40 }
 0x2a0   :  { %3086 = vmatmul.mubr.bf16.vlgmr.msra.gmra.mxu1 %v4551_v59  ;;  %v2841_v9 = vpop.f32.mrf.mxu1  ;;  %v2882_v31 = vpop.f32.mrf.mxu0 }
 0x2a1   :  { %v2842_v58 = vadd.f32 %v2841_v9, %v2801_v5  ;;  %v2883_v47 = vadd.f32 %v2882_v31, %v1443_v38 }
 0x2a2   :  { %v2843_v3 = vpop.f32.mrf.mxu1  ;;  %v2884_v43 = vpop.f32.mrf.mxu0 }
 0x2a3   :  { %3094 = vst [vmem:[%s5073_s7] sm:$0xff] %v2842_v58  ;;  %v2844_v45 = vadd.f32 %v2843_v3, %v2803_v42  ;;  %v2885_v49 = vadd.f32 %v2884_v43, %v1447_v39 }
 0x2a4   :  { %v2845_v14 = vpop.f32.mrf.mxu1  ;;  %v2886_v46 = vpop.f32.mrf.mxu0 }
 0x2a5   :  { %3095 = vst [vmem:[%s5073_s7 + $0x8] sm:$0xff] %v2844_v45 }
 0x2a6   :  { %v2846_v17 = vpop.f32.mrf.mxu1  ;;  %v2887_v59 = vpop.f32.mrf.mxu0 }
 0x2e0   :  { %v2923_v48 = vpop.f32.mrf.mxu1 }
 0x2e1   :  { %v2924_v50 = vadd.f32 %v2923_v48, %v2883_v47  ;;  %v2964_v51 = vpop.f32.mrf.mxu0 }
 0x2e2   :  { %v2925_v52 = vpop.f32.mrf.mxu1  ;;  %v2965_v37 = vadd.f32 %v2964_v51, %v1451_v61 }
 0x2e3   :  { %3096 = vst [vmem:[%s5073_s7 + $0x10] sm:$0xff] %v2924_v50  ;;  %v2926_v53 = vadd.f32 %v2925_v52, %v2885_v49  ;;  %v2966_v54 = vpop.f32.mrf.mxu0 }
 0x2e4   :  { %v2927_v55 = vpop.f32.mrf.mxu1  ;;  %v2967_v1 = vadd.f32 %v2966_v54, %v1455_v62 }
 0x2e5   :  { %3097 = vst [vmem:[%s5073_s7 + $0x18] sm:$0xff] %v2926_v53  ;;  %v2968_v15 = vpop.f32.mrf.mxu0 }
 0x2e6   :  { %v2928_v56 = vpop.f32.mrf.mxu1 }
 0x2e7   :  { %v2969_v18 = vpop.f32.mrf.mxu0 }
 0x320   :  { %v3005_v44 = vpop.f32.mrf.mxu1 }
 0x321   :  { %v3006_v6 = vadd.f32 %v3005_v44, %v2965_v37  ;;  %v3046_v7 = vpop.f32.mrf.mxu0 }
 0x322   :  { %v3007_v8 = vpop.f32.mrf.mxu1  ;;  %v3047_v22 = vadd.f32 %v3046_v7, %v1459_v20 }
 0x323   :  { %3098 = vst [vmem:[%s5073_s7 + $0x20] sm:$0xff] %v3006_v6  ;;  %v3008_v10 = vadd.f32 %v3007_v8, %v2967_v1  ;;  %v3048_v11 = vpop.f32.mrf.mxu0 }
 0x324   :  { %v3009_v12 = vpop.f32.mrf.mxu1  ;;  %v3049_v24 = vadd.f32 %v3048_v11, %v1463_v21 }
 0x325   :  { %3099 = vst [vmem:[%s5073_s7 + $0x28] sm:$0xff] %v3008_v10  ;;  %v3050_v63 = vpop.f32.mrf.mxu0 }
 0x326   :  { %v3010_v0 = vpop.f32.mrf.mxu1 }
 0x327   :  { %v3051_v2 = vpop.f32.mrf.mxu0 }
 0x360   :  { %v3087_v23 = vpop.f32.mrf.mxu1 }
 0x361   :  { %v3088_v25 = vadd.f32 %v3087_v23, %v3047_v22 }
 0x362   :  { %v3089_v26 = vpop.f32.mrf.mxu1 }
 0x363   :  { %3100 = vst [vmem:[%s5073_s7 + $0x30] sm:$0xff] %v3088_v25  ;;  %v3090_v27 = vadd.f32 %v3089_v26, %v3049_v24 }
 0x364   :  { %v3091_v28 = vpop.f32.mrf.mxu1 }
 0x365   :  { %3101 = vst [vmem:[%s5073_s7 + $0x38] sm:$0xff] %v3090_v27 }
 0x366   :  { %v3092_v29 = vpop.f32.mrf.mxu1 }

</bundles_post_ra>
